<compile_context>
chip_gen: v7x
topology: tpu7x:2x2x1
jax: 0.10.0
libtpu: 0.0.40
codegen_flags: <defaults>
</compile_context>

<pallas_src>
import functools

import jax
import jax.numpy as jnp
import numpy as np
from jax import lax
from jax.experimental import pallas as pl
from jax.experimental.pallas import tpu as pltpu

KERNEL_SIZES = (3, 4, 5)


def cnn_kernel(tok_ref, wtok_ref, bias_ref, fcw_ref, out_ref, *, Bt, T, C, O):
    """Fused embed+conv (single matmul) + ReLU + time-max-pool + fc + log_softmax.

    tok_ref  : (Bt*T, 1)        int32  token ids for this batch tile
    wtok_ref : (V, sum(K)*C)    bf16   folded table@wall (token -> all tap responses)
    bias_ref : (1, 3C + O)      f32    [b3 | b4 | b5 | fc_b]
    fcw_ref  : (3C, O)          bf16   fc weight (transposed vs. torch Linear)
    out_ref  : (Bt, O)          f32    log-probabilities
    """
    BT = Bt * T
    V = wtok_ref.shape[0]

    # ---- embedding gather + all conv taps in ONE bf16 MXU matmul ------------
    tok = tok_ref[...]                                               # (BT, 1) i32
    vocab_iota = lax.broadcasted_iota(jnp.int32, (BT, V), 1)
    onehot = (vocab_iota == tok).astype(jnp.bfloat16)                # (BT, V) bf16
    m = jnp.dot(onehot, wtok_ref[...],
                preferred_element_type=jnp.float32)                  # (BT, 12C) f32

    # Hoisted once (identical for every kernel size).
    tpos = lax.broadcasted_iota(jnp.int32, (Bt, T, C), 1)

    pooled = []
    col = 0
    for idx, K in enumerate(KERNEL_SIZES):
        # Tap k at time t needs row t+k: roll ONLY this K's k-th C-column slice
        # (rolled[r] == slice[(r + k) mod BT]); rows wrapping past a sequence
        # end are masked below before the time max-pool.
        acc = m[:, col:col + C]
        for k in range(1, K):
            acc = acc + pltpu.roll(m[:, col + k * C: col + (k + 1) * C],
                                   shift=BT - k, axis=0)
        col += K * C
        bias_k = bias_ref[:, idx * C:(idx + 1) * C]                  # (1, C) f32
        acc = (acc + bias_k).reshape(Bt, T, C)
        acc = jnp.where(tpos < T - K + 1, acc, -1e30)                # mask invalid taps
        pooled.append(jnp.max(acc, axis=1))                          # (Bt, C) max over time
    # relu(max(x)) == max(relu(x)) (monotone) -> single ReLU on pooled features
    feat = jnp.maximum(jnp.concatenate(pooled, axis=1), 0.0)         # (Bt, 3C) f32

    # ---- batched FC (bf16 MXU) + log_softmax (f32 VPU/EUP), full-block store
    logits = jnp.dot(feat.astype(jnp.bfloat16), fcw_ref[...],
                     preferred_element_type=jnp.float32)
    logits = logits + bias_ref[:, 3 * C:3 * C + O]                   # (Bt, O) f32
    mx = jnp.max(logits, axis=1, keepdims=True)
    z = logits - mx
    lse = jnp.log(jnp.sum(jnp.exp(z), axis=1, keepdims=True))
    out_ref[...] = (z - lse).astype(out_ref.dtype)


def pack_params(params):
    """Fold table@wall into one (V, sum(K)*C) bf16 token->tap table and pack biases."""
    E = params["embedding"].shape[1]
    C = params["b3"].shape[-1]
    # All conv taps packed lane-dense: columns [K=3 k0..k2 | K=4 k0..k3 | K=5 k0..k4]
    wall = jnp.concatenate(
        [params[f"w{K}"].transpose(1, 0, 2).reshape(E, K * C) for K in KERNEL_SIZES],
        axis=1)                                                      # (E, 12C) f32
    table_bf = params["embedding"].astype(jnp.bfloat16)
    wall_bf = wall.astype(jnp.bfloat16)
    # Fold (f32 accumulate, stored bf16 for the MXU). For production vocab,
    # keep this in HBM and gather rows instead of one-hot matmul.
    wtok = jnp.dot(table_bf.astype(jnp.float32),
                   wall_bf.astype(jnp.float32)).astype(jnp.bfloat16)  # (V, 12C)
    bias_all = jnp.concatenate(
        [params["b3"], params["b4"], params["b5"], params["fc_b"]], axis=1)  # (1, 3C+O)
    return dict(
        wtok=wtok,
        bias_all=bias_all.astype(jnp.float32),
        fc_w=params["fc_w"].astype(jnp.bfloat16),
    )


@functools.partial(jax.jit, static_argnames=("batch_tile",))
def cnn_classifier_forward(tokens, packed, *, batch_tile=8):
    """tokens: (B, T) int32 token ids. Returns (B, O) log-probs (f32)."""
    B, T = tokens.shape
    assert T >= max(KERNEL_SIZES), "sequence shorter than largest conv kernel"
    V, W = packed["wtok"].shape
    C = W // sum(KERNEL_SIZES)
    O = packed["fc_w"].shape[-1]
    CB = packed["bias_all"].shape[-1]
    F3 = packed["fc_w"].shape[0]

    # batch tile must keep (Bt, O) / (Bt*T, 1) on legal sublane tiles
    Bt = batch_tile if (B % batch_tile == 0) else B
    grid = (B // Bt,)

    tok2d = tokens.reshape(B * T, 1).astype(jnp.int32)
    kernel = functools.partial(cnn_kernel, Bt=Bt, T=T, C=C, O=O)

    return pl.pallas_call(
        kernel,
        out_shape=jax.ShapeDtypeStruct((B, O), jnp.float32),
        grid=grid,
        in_specs=[
            pl.BlockSpec((Bt * T, 1), lambda i: (i, 0)),   # batch tile of token ids
            pl.BlockSpec((V, W), lambda i: (0, 0)),        # folded token->tap table
            pl.BlockSpec((1, CB), lambda i: (0, 0)),       # packed biases
            pl.BlockSpec((F3, O), lambda i: (0, 0)),       # fc weight
        ],
        out_specs=pl.BlockSpec((Bt, O), lambda i: (i, 0)),
        compiler_params=pltpu.CompilerParams(
            dimension_semantics=("parallel",),             # shards across v7x's 2 TCs
            vmem_limit_bytes=32 * 1024 * 1024),
    )(tok2d, packed["wtok"], packed["bias_all"], packed["fc_w"])


def reference_forward(tokens, params):
    """Pure-JAX replica of the PyTorch eval forward, using the same bf16 weight
    storage the kernel uses (upcast to f32 for compute)."""
    def bf(x):
        return x.astype(jnp.bfloat16).astype(jnp.float32)

    emb = bf(params["embedding"])[tokens]                             # (B, T, E)
    B, T, _ = emb.shape
    feats = []
    for K in KERNEL_SIZES:
        w = bf(params[f"w{K}"])                                       # (K, E, C)
        b = params[f"b{K}"]
        Tout = T - K + 1
        acc = jnp.zeros((B, Tout, w.shape[-1]), jnp.float32)
        for k in range(K):
            acc = acc + jnp.einsum("bte,ec->btc", emb[:, k:k + Tout, :], w[k],
                                   precision=lax.Precision.HIGHEST)
        acc = jax.nn.relu(acc + b[None, :, :])
        feats.append(jnp.max(acc, axis=1))
    feat = jnp.concatenate(feats, axis=1)                             # (B, 3C)
    logits = jnp.dot(feat, bf(params["fc_w"]),
                     precision=lax.Precision.HIGHEST) + params["fc_b"]
    return jax.nn.log_softmax(logits, axis=1)


if __name__ == "__main__":
    # Small shapes consistent with the module's forward.
    VOCAB, E, O, C = 50, 32, 8, 16          # vocab, embedding_dim, output_size, kernel_dim
    B, T = 16, 16                           # batch, sequence length

    key = jax.random.PRNGKey(0)
    keys = jax.random.split(key, 10)

    params = {
        # nn.Embedding default init ~ N(0, 1)
        "embedding": jax.random.normal(keys[0], (VOCAB, E), jnp.float32),
        # nn.Linear(3C, O): stored transposed so the kernel does feat @ fc_w
        "fc_w": jax.random.uniform(keys[1], (len(KERNEL_SIZES) * C, O),
                                   jnp.float32, -0.1, 0.1),
        "fc_b": jax.random.uniform(keys[2], (1, O), jnp.float32, -0.1, 0.1),
    }
    for i, K in enumerate(KERNEL_SIZES):
        # Conv2d(1, C, (K, E)) weight torch-shape (C, 1, K, E) stored as (K, E, C)
        params[f"w{K}"] = jax.random.uniform(keys[3 + i], (K, E, C),
                                             jnp.float32, -0.1, 0.1)
        params[f"b{K}"] = jax.random.uniform(keys[6 + i], (1, C),
                                             jnp.float32, -0.1, 0.1)

    tokens = jax.random.randint(keys[9], (B, T), 0, VOCAB, dtype=jnp.int32)

    packed = pack_params(params)
    out = jax.block_until_ready(cnn_classifier_forward(tokens, packed, batch_tile=8))
    ref = reference_forward(tokens, params)

    assert out.shape == (B, O), out.shape
    # Tolerance reflects the bf16 rounding of the folded table@wall product
    # plus the bf16 FC operands (review item 1: rounding order changes).
    np.testing.assert_allclose(np.asarray(out), np.asarray(ref),
                               rtol=1e-2, atol=1e-2)
    # TODO(synk): dropout is training-only in the original forward; inference path is a no-op.
    print("KERNEL_OK")
</pallas_src>

<mosaic_0001>
module attributes {stable_mosaic.version = 11 : i64} {
  func.func @cnn_kernel(%arg0: i32, %arg1: memref<128x1xi32, #tpu.memory_space<vmem>>, %arg2: memref<50x192xbf16, #tpu.memory_space<vmem>>, %arg3: memref<1x56xf32, #tpu.memory_space<vmem>>, %arg4: memref<48x8xbf16, #tpu.memory_space<vmem>>, %arg5: memref<8x8xf32, #tpu.memory_space<vmem>>) attributes {dimension_semantics = [#tpu.dimension_semantics<parallel>], iteration_bounds = array<i64: 2>, scalar_prefetch = 0 : i64, scratch_operands = 0 : i64, tpu.core_type = #tpu.core_type<tc>, window_params = [{transform_indices = @transform_0, window_bounds = array<i64: 128, 1>}, {pipeline_mode = #tpu.pipeline_mode<synchronous>, transform_indices = @transform_1, window_bounds = array<i64: 50, 192>}, {pipeline_mode = #tpu.pipeline_mode<synchronous>, transform_indices = @transform_2, window_bounds = array<i64: 1, 56>}, {pipeline_mode = #tpu.pipeline_mode<synchronous>, transform_indices = @transform_3, window_bounds = array<i64: 48, 8>}, {transform_indices = @transform_4, window_bounds = array<i64: 8, 8>}]} {
    %c0 = arith.constant 0 : index
    %c0_0 = arith.constant 0 : index
    %0 = vector.load %arg1[%c0, %c0_0] : memref<128x1xi32, #tpu.memory_space<vmem>>, vector<128x1xi32>
    %1 = tpu.iota {dimensions = array<i32: 1>} : vector<128x50xi32>
    %2 = vector.broadcast %0 : vector<128x1xi32> to vector<128x50xi32>
    %3 = arith.cmpi eq, %1, %2 : vector<128x50xi32>
    %4 = arith.extui %3 : vector<128x50xi1> to vector<128x50xi32>
    %5 = arith.sitofp %4 : vector<128x50xi32> to vector<128x50xf32>
    %6 = arith.truncf %5 : vector<128x50xf32> to vector<128x50xbf16>
    %c0_1 = arith.constant 0 : index
    %c0_2 = arith.constant 0 : index
    %7 = vector.load %arg2[%c0_1, %c0_2] : memref<50x192xbf16, #tpu.memory_space<vmem>>, vector<50x192xbf16>
    %cst = arith.constant dense<0.000000e+00> : vector<128x192xf32>
    %8 = tpu.matmul %6, %7, %cst {dimension_numbers = #tpu.dot_dimension_numbers<[1], [0], [0], [1], [0, 0, 1, 1], [], []>} : vector<128x50xbf16>, vector<50x192xbf16>, vector<128x192xf32> -> vector<128x192xf32>
    %9 = tpu.iota {dimensions = array<i32: 1>} : vector<8x16x16xi32>
    %10 = vector.extract_strided_slice %8 {offsets = [0, 0], sizes = [128, 16], strides = [1, 1]} : vector<128x192xf32> to vector<128x16xf32>
    %11 = vector.extract_strided_slice %8 {offsets = [0, 16], sizes = [128, 16], strides = [1, 1]} : vector<128x192xf32> to vector<128x16xf32>
    %c127_i32 = arith.constant 127 : i32
    %12 = tpu.dynamic_rotate %11 by %c127_i32 dim 0 : vector<128x16xf32>, i32 -> vector<128x16xf32>
    %13 = arith.addf %10, %12 : vector<128x16xf32>
    %14 = vector.extract_strided_slice %8 {offsets = [0, 32], sizes = [128, 16], strides = [1, 1]} : vector<128x192xf32> to vector<128x16xf32>
    %c126_i32 = arith.constant 126 : i32
    %15 = tpu.dynamic_rotate %14 by %c126_i32 dim 0 : vector<128x16xf32>, i32 -> vector<128x16xf32>
    %16 = arith.addf %13, %15 : vector<128x16xf32>
    %c0_3 = arith.constant 0 : index
    %c0_4 = arith.constant 0 : index
    %17 = vector.load %arg3[%c0_3, %c0_4] : memref<1x56xf32, #tpu.memory_space<vmem>>, vector<1x16xf32>
    %18 = vector.broadcast %17 : vector<1x16xf32> to vector<128x16xf32>
    %19 = arith.addf %16, %18 : vector<128x16xf32>
    %20 = vector.shape_cast %19 : vector<128x16xf32> to vector<8x16x16xf32>
    %c14_i32 = arith.constant 14 : i32
    %21 = vector.broadcast %c14_i32 : i32 to vector<8x16x16xi32>
    %22 = arith.cmpi slt, %9, %21 : vector<8x16x16xi32>
    %cst_5 = arith.constant -1.000000e+30 : f32
    %23 = vector.broadcast %cst_5 : f32 to vector<8x16x16xf32>
    %24 = arith.select %22, %20, %23 : vector<8x16x16xi1>, vector<8x16x16xf32>
    %cst_6 = arith.constant dense<0xFF800000> : vector<8x16xf32>
    %25 = vector.multi_reduction <maximumf>, %24, %cst_6 [1] : vector<8x16x16xf32> to vector<8x16xf32>
    %26 = vector.extract_strided_slice %8 {offsets = [0, 48], sizes = [128, 16], strides = [1, 1]} : vector<128x192xf32> to vector<128x16xf32>
    %27 = vector.extract_strided_slice %8 {offsets = [0, 64], sizes = [128, 16], strides = [1, 1]} : vector<128x192xf32> to vector<128x16xf32>
    %c127_i32_7 = arith.constant 127 : i32
    %28 = tpu.dynamic_rotate %27 by %c127_i32_7 dim 0 : vector<128x16xf32>, i32 -> vector<128x16xf32>
    %29 = arith.addf %26, %28 : vector<128x16xf32>
    %30 = vector.extract_strided_slice %8 {offsets = [0, 80], sizes = [128, 16], strides = [1, 1]} : vector<128x192xf32> to vector<128x16xf32>
    %c126_i32_8 = arith.constant 126 : i32
    %31 = tpu.dynamic_rotate %30 by %c126_i32_8 dim 0 : vector<128x16xf32>, i32 -> vector<128x16xf32>
    %32 = arith.addf %29, %31 : vector<128x16xf32>
    %33 = vector.extract_strided_slice %8 {offsets = [0, 96], sizes = [128, 16], strides = [1, 1]} : vector<128x192xf32> to vector<128x16xf32>
    %c125_i32 = arith.constant 125 : i32
    %34 = tpu.dynamic_rotate %33 by %c125_i32 dim 0 : vector<128x16xf32>, i32 -> vector<128x16xf32>
    %35 = arith.addf %32, %34 : vector<128x16xf32>
    %c0_9 = arith.constant 0 : index
    %c16 = arith.constant 16 : index
    %36 = vector.load %arg3[%c0_9, %c16] : memref<1x56xf32, #tpu.memory_space<vmem>>, vector<1x16xf32>
    %37 = vector.broadcast %36 : vector<1x16xf32> to vector<128x16xf32>
    %38 = arith.addf %35, %37 : vector<128x16xf32>
    %39 = vector.shape_cast %38 : vector<128x16xf32> to vector<8x16x16xf32>
    %c13_i32 = arith.constant 13 : i32
    %40 = vector.broadcast %c13_i32 : i32 to vector<8x16x16xi32>
    %41 = arith.cmpi slt, %9, %40 : vector<8x16x16xi32>
    %cst_10 = arith.constant -1.000000e+30 : f32
    %42 = vector.broadcast %cst_10 : f32 to vector<8x16x16xf32>
    %43 = arith.select %41, %39, %42 : vector<8x16x16xi1>, vector<8x16x16xf32>
    %cst_11 = arith.constant dense<0xFF800000> : vector<8x16xf32>
    %44 = vector.multi_reduction <maximumf>, %43, %cst_11 [1] : vector<8x16x16xf32> to vector<8x16xf32>
    %45 = vector.extract_strided_slice %8 {offsets = [0, 112], sizes = [128, 16], strides = [1, 1]} : vector<128x192xf32> to vector<128x16xf32>
    %46 = vector.extract_strided_slice %8 {offsets = [0, 128], sizes = [128, 16], strides = [1, 1]} : vector<128x192xf32> to vector<128x16xf32>
    %c127_i32_12 = arith.constant 127 : i32
    %47 = tpu.dynamic_rotate %46 by %c127_i32_12 dim 0 : vector<128x16xf32>, i32 -> vector<128x16xf32>
    %48 = arith.addf %45, %47 : vector<128x16xf32>
    %49 = vector.extract_strided_slice %8 {offsets = [0, 144], sizes = [128, 16], strides = [1, 1]} : vector<128x192xf32> to vector<128x16xf32>
    %c126_i32_13 = arith.constant 126 : i32
    %50 = tpu.dynamic_rotate %49 by %c126_i32_13 dim 0 : vector<128x16xf32>, i32 -> vector<128x16xf32>
    %51 = arith.addf %48, %50 : vector<128x16xf32>
    %52 = vector.extract_strided_slice %8 {offsets = [0, 160], sizes = [128, 16], strides = [1, 1]} : vector<128x192xf32> to vector<128x16xf32>
    %c125_i32_14 = arith.constant 125 : i32
    %53 = tpu.dynamic_rotate %52 by %c125_i32_14 dim 0 : vector<128x16xf32>, i32 -> vector<128x16xf32>
    %54 = arith.addf %51, %53 : vector<128x16xf32>
    %55 = vector.extract_strided_slice %8 {offsets = [0, 176], sizes = [128, 16], strides = [1, 1]} : vector<128x192xf32> to vector<128x16xf32>
    %c124_i32 = arith.constant 124 : i32
    %56 = tpu.dynamic_rotate %55 by %c124_i32 dim 0 : vector<128x16xf32>, i32 -> vector<128x16xf32>
    %57 = arith.addf %54, %56 : vector<128x16xf32>
    %c0_15 = arith.constant 0 : index
    %c32 = arith.constant 32 : index
    %58 = vector.load %arg3[%c0_15, %c32] : memref<1x56xf32, #tpu.memory_space<vmem>>, vector<1x16xf32>
    %59 = vector.broadcast %58 : vector<1x16xf32> to vector<128x16xf32>
    %60 = arith.addf %57, %59 : vector<128x16xf32>
    %61 = vector.shape_cast %60 : vector<128x16xf32> to vector<8x16x16xf32>
    %c12_i32 = arith.constant 12 : i32
    %62 = vector.broadcast %c12_i32 : i32 to vector<8x16x16xi32>
    %63 = arith.cmpi slt, %9, %62 : vector<8x16x16xi32>
    %cst_16 = arith.constant -1.000000e+30 : f32
    %64 = vector.broadcast %cst_16 : f32 to vector<8x16x16xf32>
    %65 = arith.select %63, %61, %64 : vector<8x16x16xi1>, vector<8x16x16xf32>
    %cst_17 = arith.constant dense<0xFF800000> : vector<8x16xf32>
    %66 = vector.multi_reduction <maximumf>, %65, %cst_17 [1] : vector<8x16x16xf32> to vector<8x16xf32>
    %67 = tpu.concatenate %25, %44, %66 in 1 : vector<8x16xf32>, vector<8x16xf32>, vector<8x16xf32> -> vector<8x48xf32>
    %cst_18 = arith.constant 0.000000e+00 : f32
    %68 = vector.broadcast %cst_18 : f32 to vector<8x48xf32>
    %69 = arith.maximumf %67, %68 : vector<8x48xf32>
    %70 = arith.truncf %69 : vector<8x48xf32> to vector<8x48xbf16>
    %c0_19 = arith.constant 0 : index
    %c0_20 = arith.constant 0 : index
    %71 = vector.load %arg4[%c0_19, %c0_20] : memref<48x8xbf16, #tpu.memory_space<vmem>>, vector<48x8xbf16>
    %cst_21 = arith.constant dense<0.000000e+00> : vector<8x8xf32>
    %72 = tpu.matmul %70, %71, %cst_21 {dimension_numbers = #tpu.dot_dimension_numbers<[1], [0], [0], [1], [0, 0, 1, 1], [], []>} : vector<8x48xbf16>, vector<48x8xbf16>, vector<8x8xf32> -> vector<8x8xf32>
    %c0_22 = arith.constant 0 : index
    %c48 = arith.constant 48 : index
    %73 = vector.load %arg3[%c0_22, %c48] : memref<1x56xf32, #tpu.memory_space<vmem>>, vector<1x8xf32>
    %74 = vector.broadcast %73 : vector<1x8xf32> to vector<8x8xf32>
    %75 = arith.addf %72, %74 : vector<8x8xf32>
    %cst_23 = arith.constant dense<0xFF800000> : vector<8xf32>
    %76 = vector.multi_reduction <maximumf>, %75, %cst_23 [1] : vector<8x8xf32> to vector<8xf32>
    %77 = vector.shape_cast %76 : vector<8xf32> to vector<8x1xf32>
    %78 = vector.broadcast %77 : vector<8x1xf32> to vector<8x8xf32>
    %79 = arith.subf %75, %78 : vector<8x8xf32>
    %80 = math.exp %79 : vector<8x8xf32>
    %cst_24 = arith.constant dense<0.000000e+00> : vector<8xf32>
    %81 = vector.multi_reduction <add>, %80, %cst_24 [1] : vector<8x8xf32> to vector<8xf32>
    %82 = vector.shape_cast %81 : vector<8xf32> to vector<8x1xf32>
    %83 = math.log %82 : vector<8x1xf32>
    %84 = vector.broadcast %83 : vector<8x1xf32> to vector<8x8xf32>
    %85 = arith.subf %79, %84 : vector<8x8xf32>
    %c0_25 = arith.constant 0 : index
    %c0_26 = arith.constant 0 : index
    %86 = vector.load %arg5[%c0_25, %c0_26] : memref<8x8xf32, #tpu.memory_space<vmem>>, vector<8x8xf32>
    tpu.vector_store %arg5[%c0_25, %c0_26], %85 {strides = array<i32>} : memref<8x8xf32, #tpu.memory_space<vmem>>, vector<8x8xf32>,
    return
  }
  func.func @transform_0(%arg0: i32) -> (i32, i32) {
    %c0_i32 = arith.constant 0 : i32
    %c0_i32_0 = arith.constant 0 : i32
    return %arg0, %c0_i32 : i32, i32
  }
  func.func @transform_1(%arg0: i32) -> (i32, i32) {
    %c0_i32 = arith.constant 0 : i32
    %c0_i32_0 = arith.constant 0 : i32
    %c0_i32_1 = arith.constant 0 : i32
    return %c0_i32, %c0_i32_0 : i32, i32
  }
  func.func @transform_2(%arg0: i32) -> (i32, i32) {
    %c0_i32 = arith.constant 0 : i32
    %c0_i32_0 = arith.constant 0 : i32
    %c0_i32_1 = arith.constant 0 : i32
    return %c0_i32, %c0_i32_0 : i32, i32
  }
  func.func @transform_3(%arg0: i32) -> (i32, i32) {
    %c0_i32 = arith.constant 0 : i32
    %c0_i32_0 = arith.constant 0 : i32
    %c0_i32_1 = arith.constant 0 : i32
    return %c0_i32, %c0_i32_0 : i32, i32
  }
  func.func @transform_4(%arg0: i32) -> (i32, i32) {
    %c0_i32 = arith.constant 0 : i32
    %c0_i32_0 = arith.constant 0 : i32
    return %arg0, %c0_i32 : i32, i32
  }
}

</mosaic_0001>

<bundles_post_ra>
// kernel: cnn_classifier_forward.1
= control target key start
LH: loop header
LB: loop body
LE: loop exit
PB: predicated region body
PF: predicated region fallthrough
CT: control target
= control target key end

     0   :  { %s2494_s15 = smov 0   ;;  %s4372_s0 = inlined_call_operand.vmem [shape: s32[256,1], index: 0, kind: input, shape index: {}]   ;;  %s4373_s1 = inlined_call_operand.vmem [shape: bf16[50,192], index: 1, kind: input, shape index: {}]   ;;  %s4374_s2 = inlined_call_operand.vmem [shape: f32[1,56], index: 2, kind: input, shape index: {}]   ;;  %s4375_s3 = inlined_call_operand.vmem [shape: bf16[48,8], index: 3, kind: input, shape index: {}]   ;;  %s4376_s4 = inlined_call_operand.vmem [shape: f32[16,8], index: 4, kind: output, shape index: {}]  }
   0x1 LB: > { %s2500_s16 = sadd.s32 4294967295, %s2458_s15   ;;  %p2348_p0 = scmp.ge.s32.totalorder %s2458_s15, 1  ;;  %s2458_s15 = sphi %s2494_s15, %s14_s15  }
   0x2   : > { %p163_p1 = scmp.lt.s32.totalorder %s2458_s15, 3 }
   0x4   : > { %p164_p2 = pnand %p2348_p0, %p163_p1 }
   0x6   : > { %167 = sbr.rel (%p164_p2) target bundleno = 1590 (0x636), region = 36 }
   0xd   : > { %s2349_s17 = sshll.u32 %s2500_s16, 4  ;;  %v2433_v0 = vld [vmem:[%s4373_s1 + $0x4] ss:$8 sps:$4 sm:$0xff]   ;;  %v2460_v1 = vmov 0   ;;  %v2435_v2 = vld [vmem:[%s4373_s1] ss:$8 sps:$4 sm:$0xff]   ;;  %v215_v29 = vlaneseq }
   0xe   : > { %2432 = vset.pattern.permute.xlu1 %v2460_v1  ;;  %2431 = vset.pattern.permute.xlu0 %v2460_v1  ;;  %p189_p3 = scmp.lt.s32.totalorder %s2349_s17, 31  ;;  %v2436_v3 = vld [vmem:[%s4373_s1 + $0x14] ss:$8 sps:$4 sm:$0xff]   ;;  %v2438_v4 = vld [vmem:[%s4373_s1 + $0x10] ss:$8 sps:$4 sm:$0xff]   ;;  %vm388_vm0 = vcmask 1040384  }
   0xf   : > { %395 = vmatprep.subr.bf16.mxu0 %v2433_v0  ;;  %2406 = vmatprep.subr.bf16.mxu1 %v2433_v0  ;;  %v2439_v5 = vld [vmem:[%s4373_s1 + $0x24] ss:$8 sps:$4 sm:$0xff]   ;;  %v2441_v10 = vld [vmem:[%s4373_s1 + $0x20] ss:$8 sps:$4 sm:$0xff]   ;;  %v327_v11 = vld [vmem:[%s4373_s1 + $0x30] sm:$0x11] }
  0x10   : > { %s4575_s17 = smov (!%p189_p3, %s2349_s17), 31  ;;  %396 = vmatpush1.bf16.msra.mxu0 %v2435_v2  ;;  %2410 = vmatpush1.bf16.msra.mxu1 %v2435_v2  ;;  %v2375_v14 = vcombine.high %v327_v11, %v327_v11  ;;  %v2374_v15 = vcombine.low %v327_v11, %v327_v11  ;;  %v4377_v19 = vmov 0.0   ;;  %v2385_v28 = vld [vmem:[%s4374_s2] ss:$0 sm:$0xff]  ;;  %s2462_s12 = smov 32   ;;  %v2558_v30 = vand.u32 127, %v215_v29 }
  0x11   : > { %397 = vmatprep.subr.bf16.mxu0 %v2436_v3  ;;  %2407 = vmatprep.subr.bf16.mxu1 %v2436_v3  ;;  %s2350_s26 = sshll.u32 %s4575_s17, 3  ;;  %s2463_s13 = smov 80   ;;  %vm363_vm3 = vcmask 408576  }
  0x12   : > { %427 = vmatprep.mubr.bf16.mxu0 %v2460_v1  ;;  %477 = vmatprep.mubr.bf16.mxu1 %v2460_v1  ;;  %s2524_s29 = scalar_lea.vmem %s4372_s0, %s2350_s26  ;;  %v390_v16 = vsel %vm388_vm0, %v2374_v15, 0  ;;  %s2464_s14 = smov 64  }
  0x13   : > { %v201_v6 = vld [vmem:[%s2524_s29 + $0x10] sm:$0xff]  ;;  %v199_v7 = vld [vmem:[%s2524_s29] sm:$0xff]  ;;  %v202_v8 = vld [vmem:[%s2524_s29 + $0x18] sm:$0xff]  ;;  %s2465_s17 = smov 48   ;;  %s2466_s18 = smov 112  }
  0x14   : > { %398 = vmatpush1.bf16.msra.mxu0 %v2438_v4  ;;  %2411 = vmatpush1.bf16.msra.mxu1 %v2438_v4  ;;  %v200_v9 = vld [vmem:[%s2524_s29 + $0x8] sm:$0xff]  ;;  %v203_v13 = vld [vmem:[%s2524_s29 + $0x20] sm:$0xff]  ;;  %v210_v17 = vld [vmem:[%s2524_s29 + $0x58] sm:$0xff]  ;;  %s2467_s19 = smov 96   ;;  %p194_p4 = scmp.lt.s32.totalorder %s2500_s16, 1 }
  0x15   : > { %224 = vperm.xlu1 %2432, %v201_v6   ;;  %218 = vperm.xlu0 %2431, %v199_v7   ;;  %v204_v12 = vld [vmem:[%s2524_s29 + $0x28] sm:$0xff]  ;;  %v209_v18 = vld [vmem:[%s2524_s29 + $0x50] sm:$0xff]  ;;  %v206_v20 = vld [vmem:[%s2524_s29 + $0x38] sm:$0xff] }
  0x16   : > { %399 = vmatprep.subr.bf16.mxu0 %v2439_v5  ;;  %2408 = vmatprep.subr.bf16.mxu1 %v2439_v5  ;;  %v205_v21 = vld [vmem:[%s2524_s29 + $0x30] sm:$0xff]  ;;  %v212_v22 = vld [vmem:[%s2524_s29 + $0x68] sm:$0xff]  ;;  %v211_v23 = vld [vmem:[%s2524_s29 + $0x60] sm:$0xff]  ;;  %s4577_s16 = smov (!%p194_p4, %s2500_s16), 1 }
  0x17   : > { %v208_v24 = vld [vmem:[%s2524_s29 + $0x48] sm:$0xff]  ;;  %v207_v25 = vld [vmem:[%s2524_s29 + $0x40] sm:$0xff]  ;;  %v214_v26 = vld [vmem:[%s2524_s29 + $0x78] sm:$0xff]  ;;  %s2351_s28 = sshll.u32 %s4577_s16, 3 }
  0x18   : > { %400 = vmatpush1.bf16.msra.mxu0 %v2441_v10  ;;  %2412 = vmatpush1.bf16.msra.mxu1 %v2441_v10  ;;  %v213_v27 = vld [vmem:[%s2524_s29 + $0x70] sm:$0xff]  ;;  %s197_s5 = scalar_lea.vmem %s4376_s4, %s2351_s28 }
  0x19   : > { %227 = vperm.xlu1 %2432, %v202_v8   ;;  %221 = vperm.xlu0 %2431, %v200_v9   ;;  %v2607_v8 = vshrl.u32 %v215_v29, 7 }
  0x1a   : > { %2376 = vmatprep.subr.msk.bf16.mxu0 %vm388_vm0, %v2375_v14  ;;  %2409 = vmatprep.subr.msk.bf16.mxu1 %vm388_vm0, %v2375_v14 }
  0x1c   : > { %402 = vmatpush1.bf16.msra.mxu0 %v390_v16  ;;  %2413 = vmatpush1.bf16.msra.mxu1 %v390_v16 }
  0x1d   : > { %233 = vperm.xlu1 %2432, %v204_v12   ;;  %230 = vperm.xlu0 %2431, %v203_v13  }
  0x1e   : > { %2396 = vmatprep.subr.bf16.mxu1 %v4377_v19 }
  0x21   : > { %251 = vperm.xlu1 %2432, %v210_v17   ;;  %248 = vperm.xlu0 %2431, %v209_v18  }
  0x25   : > { %239 = vperm.xlu1 %2432, %v206_v20   ;;  %236 = vperm.xlu0 %2431, %v205_v21  }
  0x29   : > { %257 = vperm.xlu1 %2432, %v212_v22   ;;  %254 = vperm.xlu0 %2431, %v211_v23  }
  0x2d   : > { %245 = vperm.xlu1 %2432, %v208_v24   ;;  %242 = vperm.xlu0 %2431, %v207_v25  }
  0x31   : > { %263 = vperm.xlu1 %2432, %v214_v26   ;;  %260 = vperm.xlu0 %2431, %v213_v27  }
  0x35   : > { %1316 = vrot.lane.b32.xlu0 %v2385_v28, %s2462_s12 }
  0x39   : > { %2035 = vrot.lane.b32.xlu0 %v2385_v28, %s2463_s13 }
  0x94   : > { %v225_v31 = vpop.permute.xlu1 %224  ;;  %v219_v32 = vpop.permute.xlu0 %218 }
  0x95   : > { %vm265_vm1 = vcmp.eq.s32.totalorder %v2558_v30, %v219_v32  ;;  %vm267_vm5 = vcmp.eq.s32.totalorder %v2558_v30, %v225_v31 }
  0x96   : > { %v2352_v35 = vsel %vm265_vm1, 1.0, %v4377_v19  ;;  %v2354_v43 = vsel %vm267_vm5, 1.0, %v4377_v19  ;;  %vm1938_vm5 = vcmp.lt.s32.totalorder %v2607_v8, 4 }
  0x98   : > { %v228_v33 = vpop.permute.xlu1 %227  ;;  %v222_v34 = vpop.permute.xlu0 %221 }
  0x99   : > { %vm266_vm2 = vcmp.eq.s32.totalorder %v2558_v30, %v222_v34  ;;  %vm268_vm4 = vcmp.eq.s32.totalorder %v2558_v30, %v228_v33 }
  0x9a   : > { %v2353_v36 = vsel %vm266_vm2, 1.0, %v4377_v19  ;;  %v2355_v40 = vsel %vm268_vm4, 1.0, %v4377_v19  ;;  %vm591_vm2 = vcmp.lt.s32.totalorder %v2607_v8, 7  ;;  %vm1219_vm4 = vcmp.lt.s32.totalorder %v2607_v8, 5 }
  0x9b   : > { %v313_v37 = vpack.c.bf16 %v2353_v36, %v2352_v35  ;;  %v314_v46 = vpack.c.bf16 %v2355_v40, %v2354_v43 }
  0x9c   : > { %v234_v38 = vpop.permute.xlu1 %233  ;;  %v231_v39 = vpop.permute.xlu0 %230 }
  0x9d   : > { %2377 = vmatmul.mubr.msk.bf16.vlgmr.msra.gmra.mrb[0].mxu0 %vm363_vm3, %v313_v37  ;;  %vm270_vm8 = vcmp.eq.s32.totalorder %v2558_v30, %v234_v38  ;;  %vm269_vm9 = vcmp.eq.s32.totalorder %v2558_v30, %v231_v39 }
  0x9e   : > { %437 = vmatprep.mubr.bf16.mxu0 %v2460_v1  ;;  %v2357_v50 = vsel %vm270_vm8, 1.0, %v4377_v19  ;;  %v2356_v51 = vsel %vm269_vm9, 1.0, %v4377_v19  ;;  %vm2072_vm9 = vcmask 1048448  }
  0x9f   : > { %v315_v56 = vpack.c.bf16 %v2357_v50, %v2356_v51 }
  0xa0   : > { %v252_v41 = vpop.permute.xlu1 %251  ;;  %v249_v42 = vpop.permute.xlu0 %248 }
  0xa1   : > { %vm276_vm6 = vcmp.eq.s32.totalorder %v2558_v30, %v252_v41  ;;  %vm275_vm7 = vcmp.eq.s32.totalorder %v2558_v30, %v249_v42 }
  0xa2   : > { %v2363_v44 = vsel %vm276_vm6, 1.0, %v4377_v19  ;;  %v2362_v45 = vsel %vm275_vm7, 1.0, %v4377_v19  ;;  %vm1353_vm7 = vcmask 523648  }
  0xa3   : > { %v318_v47 = vpack.c.bf16 %v2363_v44, %v2362_v45 }
  0xa4   : > { %v240_v48 = vpop.permute.xlu1 %239  ;;  %v237_v49 = vpop.permute.xlu0 %236 }
  0xa5   : > { %2378 = vmatmul.mubr.msk.bf16.gmra.mrb[4].mxu0 %vm363_vm3, %v314_v46  ;;  %2382 = vmatmul.mubr.msk.bf16.vlgmr.msra.gmra.mrb[0].mxu1 %vm363_vm3, %v318_v47  ;;  %vm272_vm12 = vcmp.eq.s32.totalorder %v2558_v30, %v240_v48  ;;  %vm271_vm13 = vcmp.eq.s32.totalorder %v2558_v30, %v237_v49 }
  0xa6   : > { %447 = vmatprep.mubr.bf16.mxu0 %v2460_v1  ;;  %487 = vmatprep.mubr.bf16.mxu1 %v2460_v1  ;;  %v2359_v60 = vsel %vm272_vm12, 1.0, %v4377_v19  ;;  %v2358_v61 = vsel %vm271_vm13, 1.0, %v4377_v19  ;;  %vm2157_vm12 = vcmask 1043459   ;;  %vm2159_vm13 = vcmask 1044484  }
  0xa7   : > { %v316_v3 = vpack.c.bf16 %v2359_v60, %v2358_v61 }
  0xa8   : > { %v258_v52 = vpop.permute.xlu1 %257  ;;  %v255_v53 = vpop.permute.xlu0 %254 }
  0xa9   : > { %vm278_vm10 = vcmp.eq.s32.totalorder %v2558_v30, %v258_v52  ;;  %vm277_vm11 = vcmp.eq.s32.totalorder %v2558_v30, %v255_v53 }
  0xaa   : > { %v2365_v54 = vsel %vm278_vm10, 1.0, %v4377_v19  ;;  %v2364_v55 = vsel %vm277_vm11, 1.0, %v4377_v19  ;;  %vm2153_vm10 = vcmask 1041409   ;;  %vm2155_vm11 = vcmask 1042434  }
  0xab   : > { %v319_v57 = vpack.c.bf16 %v2365_v54, %v2364_v55 }
  0xac   : > { %v246_v58 = vpop.permute.xlu1 %245  ;;  %v243_v59 = vpop.permute.xlu0 %242 }
  0xad   : > { %2379 = vmatmul.mubr.msk.bf16.gmra.mrb[8].mxu0 %vm363_vm3, %v315_v56  ;;  %2383 = vmatmul.mubr.msk.bf16.gmra.mrb[4].mxu1 %vm363_vm3, %v319_v57  ;;  %vm274_vm0 = vcmp.eq.s32.totalorder %v2558_v30, %v246_v58  ;;  %vm273_vm1 = vcmp.eq.s32.totalorder %v2558_v30, %v243_v59 }
  0xae   : > { %457 = vmatprep.mubr.bf16.mxu0 %v2460_v1  ;;  %497 = vmatprep.mubr.bf16.mxu1 %v2460_v1  ;;  %v2361_v5 = vsel %vm274_vm0, 1.0, %v4377_v19  ;;  %v2360_v6 = vsel %vm273_vm1, 1.0, %v4377_v19  ;;  %vm2165_vm0 = vcmask 1047559   ;;  %vm2468_vm1 = vmmov 0  }
  0xaf   : > { %v317_v7 = vpack.c.bf16 %v2361_v5, %v2360_v6 }
  0xb0   : > { %v264_v62 = vpop.permute.xlu1 %263  ;;  %v261_v63 = vpop.permute.xlu0 %260 }
  0xb1   : > { %vm280_vm14 = vcmp.eq.s32.totalorder %v2558_v30, %v264_v62  ;;  %vm279_vm15 = vcmp.eq.s32.totalorder %v2558_v30, %v261_v63 }
  0xb2   : > { %v2367_v0 = vsel %vm280_vm14, 1.0, %v4377_v19  ;;  %v2366_v2 = vsel %vm279_vm15, 1.0, %v4377_v19  ;;  %vm2161_vm14 = vcmask 1045509   ;;  %vm2163_vm15 = vcmask 1046534  }
  0xb3   : > { %v320_v4 = vpack.c.bf16 %v2367_v0, %v2366_v2 }
  0xb5   : > { %2380 = vmatmul.mubr.msk.bf16.gmra.mrb[12].mxu0 %vm363_vm3, %v316_v3  ;;  %2384 = vmatmul.mubr.msk.bf16.gmra.mrb[8].mxu1 %vm363_vm3, %v320_v4 }
  0xb6   : > { %467 = vmatprep.mubr.bf16.mxu0 %v2460_v1 }
  0xbd   : > { %2381 = vmatmul.mubr.msk.bf16.gmra.mrb[16].mxu0 %vm363_vm3, %v317_v7  ;;  %vm688_vm3 = vcmp.lt.s32.totalorder %v2607_v8, 6 }
 0x170   : > { %v2609_v9 = vpop.f32.mrb[0].mxu0 }
 0x171   : > { %4448 = vst [vmem:[#allocation2_spill] sm:$0xff] %v2609_v9  ;;  %835 = vrot.lane.b32.xlu0 %v2609_v9, %s2464_s14  ;;  %v2613_v10 = vpop.f32.mrb[1].mxu0 }
 0x172   : > { %v2615_v11 = vpop.f32.mrb[2].mxu0  ;;  %v1426_v12 = vrot.slane %v2613_v10, 1 }
 0x173   : > { %4449 = vst [vmem:[#allocation3_spill] sm:$0xff] %v2615_v11  ;;  %v2618_v1 = vpop.f32.mrb[3].mxu0 }
 0x174   : > { %v1427_v13 = vrot.slane %v2618_v1, 1 }
 0x175   : > { %995 = vrot.lane.b32.xlu0 %v2609_v9, %s2465_s17 }
 0x176   : > { %v2628_v14 = vsel %vm591_vm2, %v1426_v12, %v1427_v13 }
 0x178   : > { %v2630_v15 = vpop.f32.mrb[4].mxu0  ;;  %v2632_v16 = vpop.f32.mrb[0].mxu1 }
 0x179   : > { %4450 = vst [vmem:[#allocation4_spill] sm:$0xff] %v2630_v15  ;;  %4451 = vst [vmem:[#allocation5_spill] sm:$0xff] %v2632_v16  ;;  %1155 = vrot.lane.b32.xlu0 %v2609_v9, %s2462_s12  ;;  %v2636_v17 = vpop.f32.mrb[5].mxu0  ;;  %855 = vrot.lane.b32.xlu1 %v2632_v16, %s2464_s14  ;;  %v2640_v18 = vpop.f32.mrb[1].mxu1 }
 0x17a   : > { %v1428_v20 = vrot.slane %v2636_v17, 1  ;;  %v2643_v21 = vpop.f32.mrb[6].mxu0  ;;  %v2645_v22 = vpop.f32.mrb[2].mxu1  ;;  %v1436_v25 = vrot.slane %v2640_v18, 1 }
 0x17b   : > { %4452 = vst [vmem:[#allocation6_spill] sm:$0xff] %v2643_v21  ;;  %4453 = vst [vmem:[#allocation7_spill] sm:$0xff] %v2645_v22  ;;  %v2647_v23 = vpop.f32.mrb[7].mxu0  ;;  %v2649_v24 = vpop.f32.mrb[3].mxu1 }
 0x17c   : > { %v1429_v26 = vrot.slane %v2647_v23, 1  ;;  %v1437_v27 = vrot.slane %v2649_v24, 1  ;;  %v2656_v28 = vsel %vm591_vm2, %v1427_v13, %v1428_v20 }
 0x17d   : > { %1175 = vrot.lane.b32.xlu0 %v2632_v16, %s2462_s12  ;;  %1015 = vrot.lane.b32.xlu1 %v2632_v16, %s2465_s17 }
 0x17e   : > { %v2666_v29 = vsel %vm591_vm2, %v1436_v25, %v1437_v27  ;;  %v2670_v30 = vsel %vm591_vm2, %v1428_v20, %v1429_v26 }
 0x180   : > { %v2672_v31 = vpop.f32.mrb[8].mxu0  ;;  %v2674_v32 = vpop.f32.mrb[4].mxu1 }
 0x181   : > { %4454 = vst [vmem:[#allocation8_spill] sm:$0xff] %v2672_v31  ;;  %4455 = vst [vmem:[#allocation9_spill] sm:$0xff] %v2674_v32  ;;  %v2676_v33 = vpop.f32.mrb[9].mxu0  ;;  %1554 = vrot.lane.b32.xlu1 %v2613_v10, %s2466_s18  ;;  %1574 = vrot.lane.b32.xlu0 %v2640_v18, %s2466_s18  ;;  %v2682_v34 = vpop.f32.mrb[5].mxu1 }
 0x182   : > { %v1430_v35 = vrot.slane %v2676_v33, 1  ;;  %v1438_v36 = vrot.slane %v2682_v34, 1  ;;  %v2686_v37 = vpop.f32.mrb[10].mxu0  ;;  %v2688_v38 = vpop.f32.mrb[6].mxu1 }
 0x183   : > { %4456 = vst [vmem:[#allocation10_spill] sm:$0xff] %v2686_v37  ;;  %4457 = vst [vmem:[#allocation11_spill] sm:$0xff] %v2688_v38  ;;  %v2690_v39 = vpop.f32.mrb[11].mxu0  ;;  %v2692_v40 = vpop.f32.mrb[7].mxu1 }
 0x184   : > { %v1431_v41 = vrot.slane %v2690_v39, 1  ;;  %v1439_v42 = vrot.slane %v2692_v40, 1  ;;  %v2698_v43 = vsel %vm591_vm2, %v1437_v27, %v1438_v36  ;;  %v2702_v44 = vsel %vm591_vm2, %v1429_v26, %v1430_v35 }
 0x185   : > { %1714 = vrot.lane.b32.xlu1 %v2613_v10, %s2467_s19  ;;  %1874 = vrot.lane.b32.xlu0 %v2613_v10, %s2463_s13 }
 0x186   : > { %v2710_v45 = vsel %vm591_vm2, %v1438_v36, %v1439_v42  ;;  %v2714_v46 = vsel %vm591_vm2, %v1430_v35, %v1431_v41 }
 0x188   : > { %v2716_v47 = vpop.f32.mrb[12].mxu0  ;;  %v2718_v48 = vpop.f32.mrb[8].mxu1 }
 0x189   : > { %4458 = vst [vmem:[#allocation12_spill] sm:$0xff] %v2716_v47  ;;  %4459 = vst [vmem:[#allocation13_spill] sm:$0xff] %v2718_v48  ;;  %1734 = vrot.lane.b32.xlu1 %v2640_v18, %s2467_s19  ;;  %1894 = vrot.lane.b32.xlu0 %v2640_v18, %s2463_s13  ;;  %v2724_v49 = vpop.f32.mrb[13].mxu0  ;;  %v2726_v50 = vpop.f32.mrb[9].mxu1 }
 0x18a   : > { %v1432_v51 = vrot.slane %v2724_v49, 1  ;;  %v1440_v52 = vrot.slane %v2726_v50, 1  ;;  %v2730_v53 = vpop.f32.mrb[14].mxu0  ;;  %v2732_v54 = vpop.f32.mrb[10].mxu1 }
 0x18b   : > { %4460 = vst [vmem:[#allocation14_spill] sm:$0xff] %v2730_v53  ;;  %4461 = vst [vmem:[#allocation15_spill] sm:$0xff] %v2732_v54  ;;  %v2734_v55 = vpop.f32.mrb[15].mxu0  ;;  %v2736_v56 = vpop.f32.mrb[11].mxu1 }
 0x18c   : > { %v1433_v57 = vrot.slane %v2734_v55, 1  ;;  %v1441_v58 = vrot.slane %v2736_v56, 1  ;;  %v2742_v59 = vsel %vm591_vm2, %v1439_v42, %v1440_v52  ;;  %v2746_v60 = vsel %vm591_vm2, %v1431_v41, %v1432_v51 }
 0x18d   : > { %997 = vrot.lane.b32.xlu1 %v2615_v11, %s2465_s17  ;;  %837 = vrot.lane.b32.xlu0 %v2615_v11, %s2464_s14 }
 0x18e   : > { %v2756_v61 = vsel %vm591_vm2, %v1441_v58, %v1426_v12  ;;  %v2760_v62 = vsel %vm591_vm2, %v1440_v52, %v1441_v58  ;;  %v2764_v63 = vsel %vm591_vm2, %v1432_v51, %v1433_v57 }
 0x190   : > { %v2766_v0 = vpop.f32.mrb[16].mxu0 }
 0x191   : > { %4462 = vst [vmem:[#allocation16_spill] sm:$0xff] %v2766_v0  ;;  %1017 = vrot.lane.b32.xlu0 %v2645_v22, %s2465_s17  ;;  %857 = vrot.lane.b32.xlu1 %v2645_v22, %s2464_s14  ;;  %v2772_v2 = vpop.f32.mrb[17].mxu0 }
 0x192   : > { %v1434_v3 = vrot.slane %v2772_v2, 1  ;;  %v2775_v4 = vpop.f32.mrb[18].mxu0 }
 0x193   : > { %4463 = vst [vmem:[#allocation17_spill] sm:$0xff] %v2775_v4  ;;  %v2777_v5 = vpop.f32.mrb[19].mxu0 }
 0x194   : > { %v1435_v6 = vrot.slane %v2777_v5, 1  ;;  %v2782_v7 = vsel %vm591_vm2, %v1433_v57, %v1434_v3 }
 0x195   : > { %529 = vrot.lane.b32.xlu0 %v2615_v11, %s2466_s18  ;;  %1157 = vrot.lane.b32.xlu1 %v2615_v11, %s2462_s12 }
 0x196   : > { %v2790_v10 = vsel %vm591_vm2, %v1434_v3, %v1435_v6  ;;  %v2796_v12 = vsel %vm591_vm2, %v1435_v6, %v1436_v25 }
 0x199   : > { %1177 = vrot.lane.b32.xlu1 %v2645_v22, %s2462_s12  ;;  %1736 = vrot.lane.b32.xlu0 %v2649_v24, %s2467_s19 }
 0x19d   : > { %1556 = vrot.lane.b32.xlu1 %v2618_v1, %s2466_s18  ;;  %1896 = vrot.lane.b32.xlu0 %v2649_v24, %s2463_s13 }
 0x1a1   : > { %1716 = vrot.lane.b32.xlu1 %v2618_v1, %s2467_s19  ;;  %1474 = vrot.lane.b32.xlu0 %v2628_v14, %s2466_s18 }
 0x1a5   : > { %1576 = vrot.lane.b32.xlu1 %v2649_v24, %s2466_s18  ;;  %1494 = vrot.lane.b32.xlu0 %v2666_v29, %s2466_s18 }
 0x1a9   : > { %1876 = vrot.lane.b32.xlu1 %v2618_v1, %s2463_s13  ;;  %999 = vrot.lane.b32.xlu0 %v2630_v15, %s2465_s17  ;;  %v2862_v1 = vpop.permute.xlu0 %1316 }
 0x1aa   : > { %4464 = vst [vmem:[#allocation18_spill] sm:$0xff] %v2862_v1 }
 0x1ad   : > { %839 = vrot.lane.b32.xlu1 %v2630_v15, %s2464_s14  ;;  %859 = vrot.lane.b32.xlu0 %v2674_v32, %s2464_s14  ;;  %v2872_v13 = vpop.permute.xlu0 %2035 }
 0x1ae   : > { %4465 = vst [vmem:[#allocation19_spill] sm:$0xff] %v2872_v13 }
 0x1b1   : > { %1019 = vrot.lane.b32.xlu1 %v2674_v32, %s2465_s17  ;;  %1159 = vrot.lane.b32.xlu0 %v2630_v15, %s2462_s12 }
 0x1b5   : > { %531 = vrot.lane.b32.xlu1 %v2630_v15, %s2466_s18  ;;  %1179 = vrot.lane.b32.xlu0 %v2674_v32, %s2462_s12 }
 0x1b9   : > { %1558 = vrot.lane.b32.xlu0 %v2636_v17, %s2466_s18  ;;  %1738 = vrot.lane.b32.xlu1 %v2682_v34, %s2467_s19 }
 0x1bd   : > { %1718 = vrot.lane.b32.xlu0 %v2636_v17, %s2467_s19  ;;  %1898 = vrot.lane.b32.xlu1 %v2682_v34, %s2463_s13 }
 0x1c1   : > { %1001 = vrot.lane.b32.xlu1 %v2643_v21, %s2465_s17  ;;  %1578 = vrot.lane.b32.xlu0 %v2682_v34, %s2466_s18 }
 0x1c5   : > { %1161 = vrot.lane.b32.xlu1 %v2643_v21, %s2462_s12  ;;  %1878 = vrot.lane.b32.xlu0 %v2636_v17, %s2463_s13 }
 0x1c9   : > { %841 = vrot.lane.b32.xlu0 %v2643_v21, %s2464_s14  ;;  %1021 = vrot.lane.b32.xlu1 %v2688_v38, %s2465_s17 }
 0x1cd   : > { %1181 = vrot.lane.b32.xlu1 %v2688_v38, %s2462_s12  ;;  %861 = vrot.lane.b32.xlu0 %v2688_v38, %s2464_s14 }
 0x1d1   : > { %1560 = vrot.lane.b32.xlu1 %v2647_v23, %s2466_s18  ;;  %1580 = vrot.lane.b32.xlu0 %v2692_v40, %s2466_s18 }
 0x1d5   : > { %1720 = vrot.lane.b32.xlu1 %v2647_v23, %s2467_s19  ;;  %1476 = vrot.lane.b32.xlu0 %v2656_v28, %s2466_s18 }
 0x1d9   : > { %1880 = vrot.lane.b32.xlu1 %v2647_v23, %s2463_s13  ;;  %1498 = vrot.lane.b32.xlu0 %v2710_v45, %s2466_s18 }
 0x1dd   : > { %1740 = vrot.lane.b32.xlu1 %v2692_v40, %s2467_s19  ;;  %1003 = vrot.lane.b32.xlu0 %v2672_v31, %s2465_s17 }
 0x1e1   : > { %1900 = vrot.lane.b32.xlu1 %v2692_v40, %s2463_s13  ;;  %1163 = vrot.lane.b32.xlu0 %v2672_v31, %s2462_s12 }
 0x1e3   : > { %v2878_v14 = vpop.permute.xlu0 %835 }
 0x1e5   : > { %1496 = vrot.lane.b32.xlu1 %v2698_v43, %s2466_s18  ;;  %1023 = vrot.lane.b32.xlu0 %v2718_v48, %s2465_s17 }
 0x1e7   : > { %v2884_v17 = vpop.permute.xlu0 %995 }
 0x1e9   : > { %1478 = vrot.lane.b32.xlu1 %v2670_v30, %s2466_s18  ;;  %1183 = vrot.lane.b32.xlu0 %v2718_v48, %s2462_s12 }
 0x1eb   : > { %v2890_v18 = vpop.permute.xlu1 %855  ;;  %v2892_v20 = vpop.permute.xlu0 %1155 }
 0x1ec   : > { %4466 = vst [vmem:[#allocation20_spill] sm:$0xff] %v2890_v18 }
 0x1ed   : > { %843 = vrot.lane.b32.xlu1 %v2672_v31, %s2464_s14  ;;  %1562 = vrot.lane.b32.xlu0 %v2676_v33, %s2466_s18 }
 0x1ef   : > { %v2898_v23 = vpop.permute.xlu1 %1015  ;;  %v2900_v24 = vpop.permute.xlu0 %1175 }
 0x1f0   : > { %4467 = vst [vmem:[#allocation21_spill] sm:$0xff] %v2898_v23  ;;  %4468 = vst [vmem:[#allocation22_spill] sm:$0xff] %v2900_v24 }
 0x1f1   : > { %1722 = vrot.lane.b32.xlu0 %v2676_v33, %s2467_s19  ;;  %863 = vrot.lane.b32.xlu1 %v2718_v48, %s2464_s14 }
 0x1f3   : > { %v2906_v25 = vpop.permute.xlu1 %1554  ;;  %v2908_v26 = vpop.permute.xlu0 %1574 }
 0x1f4   : > { %4469 = vst [vmem:[#allocation23_spill] sm:$0xff] %v2908_v26 }
 0x1f5   : > { %1882 = vrot.lane.b32.xlu0 %v2676_v33, %s2463_s13  ;;  %1582 = vrot.lane.b32.xlu1 %v2726_v50, %s2466_s18 }
 0x1f7   : > { %v2914_v27 = vpop.permute.xlu1 %1714  ;;  %v2916_v28 = vpop.permute.xlu0 %1874 }
 0x1f8   : > { %4470 = vst [vmem:[#allocation24_spill] sm:$0xff] %v2914_v27  ;;  %4471 = vst [vmem:[#allocation25_spill] sm:$0xff] %v2916_v28 }
 0x1f9   : > { %1742 = vrot.lane.b32.xlu0 %v2726_v50, %s2467_s19  ;;  %845 = vrot.lane.b32.xlu1 %v2686_v37, %s2464_s14 }
 0x1fb   : > { %v2922_v29 = vpop.permute.xlu1 %1734  ;;  %v2924_v30 = vpop.permute.xlu0 %1894 }
 0x1fc   : > { %4472 = vst [vmem:[#allocation26_spill] sm:$0xff] %v2922_v29  ;;  %4473 = vst [vmem:[#allocation27_spill] sm:$0xff] %v2924_v30 }
 0x1fd   : > { %1902 = vrot.lane.b32.xlu0 %v2726_v50, %s2463_s13  ;;  %1005 = vrot.lane.b32.xlu1 %v2686_v37, %s2465_s17 }
 0x1ff   : > { %v2930_v33 = vpop.permute.xlu1 %997  ;;  %v2932_v34 = vpop.permute.xlu0 %837 }
 0x201   : > { %1165 = vrot.lane.b32.xlu1 %v2686_v37, %s2462_s12  ;;  %1025 = vrot.lane.b32.xlu0 %v2732_v54, %s2465_s17 }
 0x203   : > { %v2938_v35 = vpop.permute.xlu1 %857  ;;  %v2940_v36 = vpop.permute.xlu0 %1017 }
 0x204   : > { %v4409_v13 = vrot.slane %v2940_v36, 2 }
 0x205   : > { %1185 = vrot.lane.b32.xlu0 %v2732_v54, %s2462_s12  ;;  %865 = vrot.lane.b32.xlu1 %v2732_v54, %s2464_s14 }
 0x207   : > { %v2946_v40 = vpop.permute.xlu1 %1157  ;;  %v2948_v41 = vpop.permute.xlu0 %529 }
 0x208   : > { %4474 = vst [vmem:[#allocation28_spill] sm:$0xff] %v2948_v41 }
 0x209   : > { %1564 = vrot.lane.b32.xlu0 %v2690_v39, %s2466_s18  ;;  %1884 = vrot.lane.b32.xlu1 %v2690_v39, %s2463_s13 }
 0x20b   : > { %v2954_v42 = vpop.permute.xlu1 %1177  ;;  %v2956_v43 = vpop.permute.xlu0 %1736 }
 0x20d   : > { %1724 = vrot.lane.b32.xlu0 %v2690_v39, %s2467_s19  ;;  %1584 = vrot.lane.b32.xlu1 %v2736_v56, %s2466_s18 }
 0x20f   : > { %v2962_v45 = vpop.permute.xlu1 %1556  ;;  %v2964_v50 = vpop.permute.xlu0 %1896 }
 0x211   : > { %1482 = vrot.lane.b32.xlu0 %v2714_v46, %s2466_s18  ;;  %1744 = vrot.lane.b32.xlu1 %v2736_v56, %s2467_s19 }
 0x213   : > { %v2970_v51 = vpop.permute.xlu1 %1716  ;;  %v2972_v52 = vpop.permute.xlu0 %1474 }
 0x214   : > { %4475 = vst [vmem:[#allocation29_spill] sm:$0xff] %v2972_v52 }
 0x215   : > { %847 = vrot.lane.b32.xlu0 %v2716_v47, %s2464_s14  ;;  %1904 = vrot.lane.b32.xlu1 %v2736_v56, %s2463_s13 }
 0x217   : > { %v2978_v39 = vpop.permute.xlu1 %1576  ;;  %v2980_v57 = vpop.permute.xlu0 %1494 }
 0x218   : > { %4476 = vst [vmem:[#allocation30_spill] sm:$0xff] %v2980_v57 }
 0x219   : > { %1007 = vrot.lane.b32.xlu0 %v2716_v47, %s2465_s17  ;;  %1480 = vrot.lane.b32.xlu1 %v2702_v44, %s2466_s18 }
 0x21b   : > { %v2986_v46 = vpop.permute.xlu1 %1876  ;;  %v2988_v58 = vpop.permute.xlu0 %999 }
 0x21d   : > { %1167 = vrot.lane.b32.xlu0 %v2716_v47, %s2462_s12  ;;  %1500 = vrot.lane.b32.xlu1 %v2742_v59, %s2466_s18 }
 0x21f   : > { %v2994_v56 = vpop.permute.xlu1 %839  ;;  %v2996_v3 = vpop.permute.xlu0 %859 }
 0x221   : > { %1886 = vrot.lane.b32.xlu0 %v2724_v49, %s2463_s13  ;;  %1504 = vrot.lane.b32.xlu1 %v2756_v61, %s2466_s18 }
 0x223   : > { %v3002_v44 = vpop.permute.xlu1 %1019  ;;  %v3004_v6 = vpop.permute.xlu0 %1159 }
 0x225   : > { %1169 = vrot.lane.b32.xlu0 %v2730_v53, %s2462_s12  ;;  %1502 = vrot.lane.b32.xlu1 %v2760_v62, %s2466_s18 }
 0x227   : > { %v3010_v59 = vpop.permute.xlu1 %531  ;;  %v3012_v19 = vpop.permute.xlu0 %1179 }
 0x228   : > { %4477 = vst [vmem:[#allocation31_spill] sm:$0xff] %v3010_v59 }
 0x229   : > { %1888 = vrot.lane.b32.xlu0 %v2734_v55, %s2463_s13  ;;  %1566 = vrot.lane.b32.xlu1 %v2724_v49, %s2466_s18 }
 0x22b   : > { %v3018_v61 = vpop.permute.xlu1 %1738  ;;  %v3020_v41 = vpop.permute.xlu0 %1558 }
 0x22d   : > { %1726 = vrot.lane.b32.xlu1 %v2724_v49, %s2467_s19  ;;  %1484 = vrot.lane.b32.xlu0 %v2746_v60, %s2466_s18 }
 0x22f   : > { %v3026_v62 = vpop.permute.xlu1 %1898  ;;  %v3028_v59 = vpop.permute.xlu0 %1718 }
 0x231   : > { %849 = vrot.lane.b32.xlu1 %v2730_v53, %s2464_s14  ;;  %1486 = vrot.lane.b32.xlu0 %v2764_v63, %s2466_s18 }
 0x233   : > { %v3034_v48 = vpop.permute.xlu1 %1001  ;;  %v3036_v54 = vpop.permute.xlu0 %1578 }
 0x235   : > { %1009 = vrot.lane.b32.xlu1 %v2730_v53, %s2465_s17  ;;  %851 = vrot.lane.b32.xlu0 %v2766_v0, %s2464_s14 }
 0x237   : > { %v3042_v49 = vpop.permute.xlu1 %1161  ;;  %v3044_v60 = vpop.permute.xlu0 %1878 }
 0x239   : > { %1568 = vrot.lane.b32.xlu1 %v2734_v55, %s2466_s18  ;;  %1011 = vrot.lane.b32.xlu0 %v2766_v0, %s2465_s17 }
 0x23b   : > { %v3050_v63 = vpop.permute.xlu1 %1021  ;;  %v3052_v37 = vpop.permute.xlu0 %841 }
 0x23d   : > { %1728 = vrot.lane.b32.xlu1 %v2734_v55, %s2467_s19  ;;  %1570 = vrot.lane.b32.xlu0 %v2772_v2, %s2466_s18 }
 0x23f   : > { %v3058_v53 = vpop.permute.xlu1 %1181  ;;  %v3060_v47 = vpop.permute.xlu0 %861 }
 0x241   : > { %1171 = vrot.lane.b32.xlu1 %v2766_v0, %s2462_s12  ;;  %1730 = vrot.lane.b32.xlu0 %v2772_v2, %s2467_s19 }
 0x243   : > { %v3066_v31 = vpop.permute.xlu1 %1560  ;;  %v3068_v38 = vpop.permute.xlu0 %1580 }
 0x245   : > { %1890 = vrot.lane.b32.xlu1 %v2772_v2, %s2463_s13  ;;  %853 = vrot.lane.b32.xlu0 %v2775_v4, %s2464_s14 }
 0x247   : > { %v3074_v55 = vpop.permute.xlu1 %1720  ;;  %v3076_v21 = vpop.permute.xlu0 %1476 }
 0x248   : > { %4478 = vst [vmem:[#allocation32_spill] sm:$0xff] %v3076_v21  ;;  %v1044_v21 = vrot.slane %v2930_v33, 2  ;;  %v4417_v33 = vrot.slane %v2884_v17, 2 }
 0x249   : > { %1173 = vrot.lane.b32.xlu1 %v2775_v4, %s2462_s12  ;;  %1013 = vrot.lane.b32.xlu0 %v2775_v4, %s2465_s17  ;;  %v4408_v4 = vrot.slane %v2898_v23, 2  ;;  %v4481_v23 = vrot.slane %v2962_v45, 2 }
 0x24b   : > { %v3082_v0 = vpop.permute.xlu1 %1880  ;;  %v3084_v32 = vpop.permute.xlu0 %1498 }
 0x24c   : > { %4479 = vst [vmem:[#allocation33_spill] sm:$0xff] %v3084_v32 }
 0x24d   : > { %1572 = vrot.lane.b32.xlu1 %v2777_v5, %s2466_s18  ;;  %1732 = vrot.lane.b32.xlu0 %v2777_v5, %s2467_s19 }
 0x24f   : > { %v3090_v2 = vpop.permute.xlu1 %1740  ;;  %v3092_v15 = vpop.permute.xlu0 %1003 }
 0x251   : > { %1892 = vrot.lane.b32.xlu1 %v2777_v5, %s2463_s13  ;;  %1490 = vrot.lane.b32.xlu0 %v2790_v10, %s2466_s18  ;;  %v1063_v5 = vsel %vm688_vm3, %v4408_v4, %v4409_v13  ;;  %v4410_v10 = vrot.slane %v2906_v25, 2 }
 0x253   : > { %v3101_v32 = vpop.permute.xlu1 %1900  ;;  %v3103_v57 = vpop.permute.xlu0 %1163  ;;  %v1632_v4 = vsel %vm688_vm3, %v4410_v10, %v4481_v23  ;;  %v4483_v23 = vrot.slane %v2932_v34, 1 }
 0x255   : > { %1488 = vrot.lane.b32.xlu1 %v2782_v7, %s2466_s18  ;;  %1111 = vrot.lane.b32.xlu0 %v1063_v5, %s2465_s17  ;;  %v4413_v7 = vrot.slane %v2878_v14, 1  ;;  %v4414_v5 = vrot.slane %v2914_v27, 3  ;;  %v4489_v27 = vrot.slane %v2994_v56, 1 }
 0x257   : > { %v3116_v52 = vpop.permute.xlu1 %1496  ;;  %v3118_v1 = vpop.permute.xlu0 %1023 }
 0x258   : > { %4480 = vst [vmem:[#allocation34_spill] sm:$0xff] %v3116_v52  ;;  %v4419_v52 = vrot.slane %v2908_v26, 2  ;;  %v1773_v26 = vrot.slane %v2956_v43, 3  ;;  %v4427_v43 = vrot.slane %v2922_v29, 3 }
 0x259   : > { %1492 = vrot.lane.b32.xlu1 %v2796_v12, %s2466_s18  ;;  %1650 = vrot.lane.b32.xlu0 %v1632_v4, %s2466_s18  ;;  %v913_v4 = vsel %vm591_vm2, %v4413_v7, %v4483_v23  ;;  %v4484_v12 = vrot.slane %v2970_v51, 3  ;;  %v894_v23 = vrot.slane %v2938_v35, 1  ;;  %v4421_v35 = vrot.slane %v2890_v18, 1 }
 0x25b   : > { %v3134_v13 = vpop.permute.xlu1 %1478  ;;  %v3136_v22 = vpop.permute.xlu0 %1183  ;;  %v1792_v10 = vsel %vm1219_vm4, %v4414_v5, %v4484_v12  ;;  %v1073_v12 = vsel %vm688_vm3, %v4417_v33, %v1044_v21  ;;  %v4424_v5 = vrot.slane %v2916_v28, 4  ;;  %v1204_v33 = vrot.slane %v2946_v40, 3 }
 0x25c   : > { %4482 = vst [vmem:[#allocation35_spill] sm:$0xff] %v3134_v13  ;;  %v4426_v40 = vrot.slane %v2892_v20, 3 }
 0x25d   : > { %931 = vrot.lane.b32.xlu1 %v913_v4, %s2465_s17  ;;  %1810 = vrot.lane.b32.xlu0 %v1792_v10, %s2466_s18  ;;  %v4485_v4 = vrot.slane %v2978_v39, 2 }
 0x25f   : > { %v3156_v13 = vpop.permute.xlu1 %843  ;;  %v3158_v11 = vpop.permute.xlu0 %1562  ;;  %v1622_v10 = vsel %vm688_vm3, %v4419_v52, %v4485_v4  ;;  %v4486_v4 = vrot.slane %v2986_v46, 4 }
 0x261   : > { %1091 = vrot.lane.b32.xlu1 %v1073_v12, %s2465_s17  ;;  %1670 = vrot.lane.b32.xlu0 %v1622_v10, %s2466_s18  ;;  %v903_v12 = vsel %vm591_vm2, %v4421_v35, %v894_v23  ;;  %v1953_v10 = vsel %vm1938_vm5, %v4424_v5, %v4486_v4  ;;  %v1214_v35 = vrot.slane %v2954_v42, 3  ;;  %v1234_v4 = vsel %vm1219_vm4, %v4426_v40, %v1204_v33 }
 0x262   : > { %v4433_v42 = vrot.slane %v2924_v30, 4  ;;  %v4434_v40 = vrot.slane %v3036_v54, 2 }
 0x263   : > { %v3176_v7 = vpop.permute.xlu1 %863  ;;  %v3178_v16 = vpop.permute.xlu0 %1722 }
 0x265   : > { %951 = vrot.lane.b32.xlu1 %v903_v12, %s2465_s17  ;;  %1971 = vrot.lane.b32.xlu0 %v1953_v10, %s2466_s18  ;;  %v1782_v12 = vsel %vm1219_vm4, %v4427_v43, %v1773_v26  ;;  %v4430_v10 = vrot.slane %v2900_v24, 3  ;;  %v1055_v24 = vrot.slane %v3002_v44, 2  ;;  %v4435_v44 = vrot.slane %v3004_v6, 3 }
 0x267   : > { %v3197_v52 = vpop.permute.xlu1 %1582  ;;  %v3199_v18 = vpop.permute.xlu0 %1882  ;;  %v1224_v43 = vsel %vm1219_vm4, %v4430_v10, %v1214_v35  ;;  %v4488_v10 = vrot.slane %v2996_v3, 1 }
 0x269   : > { %1252 = vrot.lane.b32.xlu1 %v1234_v4, %s2465_s17  ;;  %1830 = vrot.lane.b32.xlu0 %v1782_v12, %s2466_s18  ;;  %v4487_v4 = vrot.slane %v2964_v50, 4  ;;  %v902_v30 = vsel %vm591_vm2, %v894_v23, %v4488_v10  ;;  %v4491_v23 = vrot.slane %v2940_v36, 2  ;;  %v4492_v10 = vrot.slane %v2988_v58, 2 }
 0x26a   : > { %v1774_v36 = vrot.slane %v3018_v61, 3  ;;  %v1604_v61 = vrot.slane %v3020_v41, 2  ;;  %v4437_v41 = vrot.slane %v3058_v53, 3 }
 0x26b   : > { %v3215_v5 = vpop.permute.xlu1 %845  ;;  %v3217_v9 = vpop.permute.xlu0 %1742  ;;  %v1943_v12 = vsel %vm1938_vm5, %v4433_v42, %v4487_v4  ;;  %v4490_v4 = vrot.slane %v2932_v34, 1  ;;  %v1062_v34 = vsel %vm688_vm3, %v4491_v23, %v1055_v24  ;;  %v1233_v23 = vsel %vm1219_vm4, %v1204_v33, %v4435_v44 }
 0x26c   : > { %v4495_v44 = vrot.slane %v2970_v51, 3 }
 0x26d   : > { %1272 = vrot.lane.b32.xlu1 %v1224_v43, %s2465_s17  ;;  %1991 = vrot.lane.b32.xlu0 %v1943_v12, %s2466_s18  ;;  %v912_v43 = vsel %vm591_vm2, %v4490_v4, %v4489_v27  ;;  %v1072_v27 = vsel %vm688_vm3, %v1044_v21, %v4492_v10  ;;  %v4493_v21 = vrot.slane %v2978_v39, 2  ;;  %v1781_v39 = vsel %vm1219_vm4, %v1773_v26, %v1774_v36 }
 0x26f   : > { %v3233_v29 = vpop.permute.xlu1 %1005  ;;  %v3235_v28 = vpop.permute.xlu0 %1902 }
 0x271   : > { %953 = vrot.lane.b32.xlu1 %v902_v30, %s2465_s17  ;;  %933 = vrot.lane.b32.xlu0 %v912_v43, %s2465_s17  ;;  %v1215_v43 = vrot.slane %v3012_v19, 3 }
 0x273   : > { %v3251_v12 = vpop.permute.xlu1 %1165  ;;  %v3253_v42 = vpop.permute.xlu0 %1025  ;;  %v1223_v33 = vsel %vm1219_vm4, %v1214_v35, %v1215_v43 }
 0x275   : > { %1113 = vrot.lane.b32.xlu1 %v1062_v34, %s2465_s17  ;;  %1093 = vrot.lane.b32.xlu0 %v1072_v27, %s2465_s17  ;;  %v1621_v34 = vsel %vm688_vm3, %v4493_v21, %v4434_v40  ;;  %v4436_v27 = vrot.slane %v3050_v63, 2  ;;  %v4494_v40 = vrot.slane %v2962_v45, 2  ;;  %v4438_v45 = vrot.slane %v3066_v31, 2 }
 0x277   : > { %v3267_v30 = vpop.permute.xlu1 %865  ;;  %v3269_v4 = vpop.permute.xlu0 %1185  ;;  %v1631_v35 = vsel %vm688_vm3, %v4494_v40, %v1604_v61  ;;  %v1061_v26 = vsel %vm688_vm3, %v1055_v24, %v4436_v27  ;;  %v1222_v40 = vsel %vm1219_vm4, %v1215_v43, %v4437_v41  ;;  %v4439_v27 = vrot.slane %v3074_v55, 3 }
 0x278   : > { %v1630_v51 = vsel %vm688_vm3, %v1604_v61, %v4438_v45  ;;  %v4496_v43 = vrot.slane %v2986_v46, 4  ;;  %v4440_v41 = vrot.slane %v3082_v0, 4  ;;  %v4497_v61 = vrot.slane %v2964_v50, 4 }
 0x279   : > { %1254 = vrot.lane.b32.xlu0 %v1233_v23, %s2465_s17  ;;  %1672 = vrot.lane.b32.xlu1 %v1621_v34, %s2466_s18  ;;  %v1764_v34 = vrot.slane %v3028_v59, 3  ;;  %v1924_v59 = vrot.slane %v3044_v60, 4  ;;  %v1934_v60 = vrot.slane %v3026_v62, 4  ;;  %v886_v62 = vrot.slane %v3052_v37, 1 }
 0x27a   : > { %v1046_v37 = vrot.slane %v3034_v48, 2  ;;  %v4442_v45 = vrot.slane %v3090_v2, 3  ;;  %v1206_v48 = vrot.slane %v3042_v49, 3  ;;  %v896_v49 = vrot.slane %v3060_v47, 1 }
 0x27b   : > { %v3285_v10 = vpop.permute.xlu1 %1884  ;;  %v3287_v19 = vpop.permute.xlu0 %1564  ;;  %v1791_v24 = vsel %vm1219_vm4, %v4495_v44, %v1764_v34  ;;  %v1952_v44 = vsel %vm1938_vm5, %v4496_v43, %v1924_v59  ;;  %v1790_v46 = vsel %vm1219_vm4, %v1764_v34, %v4439_v27  ;;  %v1951_v50 = vsel %vm1938_vm5, %v1924_v59, %v4440_v41 }
 0x27c   : > { %v4498_v34 = vrot.slane %v2994_v56, 1  ;;  %v4441_v27 = vrot.slane %v3101_v32, 4  ;;  %v1780_v56 = vsel %vm1219_vm4, %v1774_v36, %v4442_v45  ;;  %v4499_v59 = vrot.slane %v2988_v58, 2 }
 0x27d   : > { %1274 = vrot.lane.b32.xlu0 %v1223_v33, %s2465_s17  ;;  %1832 = vrot.lane.b32.xlu1 %v1781_v39, %s2466_s18  ;;  %v887_v41 = vrot.slane %v3156_v13, 1  ;;  %v4500_v36 = vrot.slane %v3004_v6, 3  ;;  %v1615_v47 = vrot.slane %v3068_v38, 2  ;;  %v1047_v13 = vrot.slane %v3092_v15, 2 }
 0x27e   : > { %v1941_v58 = vsel %vm1938_vm5, %v1934_v60, %v4441_v27  ;;  %v4501_v6 = vrot.slane %v2996_v3, 1  ;;  %v1207_v38 = vrot.slane %v3103_v57, 3  ;;  %v4443_v15 = vrot.slane %v3176_v7, 1 }
 0x27f   : > { %v3297_v23 = vpop.permute.xlu1 %1584  ;;  %v3299_v21 = vpop.permute.xlu0 %1724  ;;  %v4502_v3 = vrot.slane %v3036_v54, 2  ;;  %v1057_v57 = vrot.slane %v3118_v1, 2  ;;  %v4444_v27 = vrot.slane %v3136_v22, 3  ;;  %v4503_v45 = vrot.slane %v3050_v63, 2 }
 0x280   : > { %v900_v54 = vsel %vm591_vm2, %v896_v49, %v4443_v15  ;;  %v1616_v63 = vrot.slane %v3197_v52, 2  ;;  %v1058_v1 = vrot.slane %v3253_v42, 2  ;;  %v1776_v42 = vrot.slane %v3217_v9, 3 }
 0x281   : > { %1652 = vrot.lane.b32.xlu0 %v1631_v35, %s2466_s18  ;;  %1115 = vrot.lane.b32.xlu1 %v1061_v26, %s2465_s17  ;;  %v1218_v9 = vrot.slane %v3269_v4, 3  ;;  %v4515_v4 = vrot.slane %v3101_v32, 4  ;;  %v4517_v32 = vrot.slane %v2878_v14, 1  ;;  %v1767_v14 = vrot.slane %v3299_v21, 3 }
 0x283   : > { %v3313_v33 = vpop.permute.xlu1 %1744  ;;  %v3315_v39 = vpop.permute.xlu0 %1482 }
 0x285   : > { %1276 = vrot.lane.b32.xlu1 %v1222_v40, %s2465_s17  ;;  %1812 = vrot.lane.b32.xlu0 %v1791_v24, %s2466_s18 }
 0x287   : > { %v3329_v35 = vpop.permute.xlu1 %1904  ;;  %v3331_v26 = vpop.permute.xlu0 %847 }
 0x289   : > { %1654 = vrot.lane.b32.xlu1 %v1630_v51, %s2466_s18  ;;  %1973 = vrot.lane.b32.xlu0 %v1952_v44, %s2466_s18  ;;  %v1942_v51 = vsel %vm1938_vm5, %v4497_v61, %v1934_v60  ;;  %v910_v60 = vsel %vm591_vm2, %v886_v62, %v887_v41 }
 0x28b   : > { %v3345_v40 = vpop.permute.xlu1 %1480  ;;  %v3347_v24 = vpop.permute.xlu0 %1007 }
 0x28d   : > { %1814 = vrot.lane.b32.xlu1 %v1790_v46, %s2466_s18  ;;  %1993 = vrot.lane.b32.xlu0 %v1942_v51, %s2466_s18  ;;  %v911_v46 = vsel %vm591_vm2, %v4498_v34, %v886_v62  ;;  %v1070_v62 = vsel %vm688_vm3, %v1046_v37, %v1047_v13 }
 0x28f   : > { %v3361_v43 = vpop.permute.xlu1 %1500  ;;  %v3363_v44 = vpop.permute.xlu0 %1167 }
 0x291   : > { %1975 = vrot.lane.b32.xlu1 %v1951_v50, %s2466_s18  ;;  %935 = vrot.lane.b32.xlu0 %v911_v46, %s2465_s17  ;;  %v1071_v50 = vsel %vm688_vm3, %v4499_v59, %v1046_v37  ;;  %v1231_v37 = vsel %vm1219_vm4, %v1206_v48, %v1207_v38 }
 0x293   : > { %v3377_v61 = vpop.permute.xlu1 %1504  ;;  %v3379_v51 = vpop.permute.xlu0 %1886 }
 0x295   : > { %1834 = vrot.lane.b32.xlu1 %v1780_v56, %s2466_s18  ;;  %1095 = vrot.lane.b32.xlu0 %v1071_v50, %s2465_s17  ;;  %v1232_v56 = vsel %vm1219_vm4, %v4500_v36, %v1206_v48  ;;  %v901_v36 = vsel %vm591_vm2, %v4501_v6, %v896_v49  ;;  %v1620_v6 = vsel %vm688_vm3, %v4502_v3, %v1615_v47  ;;  %v4504_v49 = vrot.slane %v3058_v53, 3 }
 0x296   : > { %v1060_v48 = vsel %vm688_vm3, %v4503_v45, %v1057_v57  ;;  %v4505_v45 = vrot.slane %v3158_v11, 2 }
 0x297   : > { %v3393_v34 = vpop.permute.xlu1 %1502  ;;  %v3395_v46 = vpop.permute.xlu0 %1169 }
 0x299   : > { %1995 = vrot.lane.b32.xlu1 %v1941_v58, %s2466_s18  ;;  %1256 = vrot.lane.b32.xlu0 %v1232_v56, %s2465_s17 }
 0x29b   : > { %v3409_v59 = vpop.permute.xlu1 %1566  ;;  %v3411_v50 = vpop.permute.xlu0 %1888 }
 0x29d   : > { %937 = vrot.lane.b32.xlu1 %v910_v60, %s2465_s17  ;;  %955 = vrot.lane.b32.xlu0 %v901_v36, %s2465_s17 }
 0x29f   : > { %v3423_v58 = vpop.permute.xlu1 %1726  ;;  %v3425_v56 = vpop.permute.xlu0 %1484 }
 0x2a1   : > { %1097 = vrot.lane.b32.xlu1 %v1070_v62, %s2465_s17  ;;  %1674 = vrot.lane.b32.xlu0 %v1620_v6, %s2466_s18  ;;  %v4445_v6 = vrot.slane %v3215_v5, 1 }
 0x2a3   : > { %v3437_v60 = vpop.permute.xlu1 %849  ;;  %v3439_v36 = vpop.permute.xlu0 %1486  ;;  %v909_v53 = vsel %vm591_vm2, %v887_v41, %v4445_v6  ;;  %v4507_v41 = vrot.slane %v3233_v29, 2  ;;  %v4508_v6 = vrot.slane %v3178_v16, 3 }
 0x2a5   : > { %1258 = vrot.lane.b32.xlu1 %v1231_v37, %s2465_s17  ;;  %957 = vrot.lane.b32.xlu0 %v900_v54, %s2465_s17  ;;  %v1221_v37 = vsel %vm1219_vm4, %v4504_v49, %v4444_v27  ;;  %v4506_v49 = vrot.slane %v3066_v31, 2  ;;  %v1069_v31 = vsel %vm688_vm3, %v1047_v13, %v4507_v41  ;;  %v4510_v13 = vrot.slane %v3251_v12, 3 }
 0x2a6   : > { %v4511_v41 = vrot.slane %v3199_v18, 4 }
 0x2a7   : > { %v3451_v62 = vpop.permute.xlu1 %1009  ;;  %v3453_v3 = vpop.permute.xlu0 %851 }
 0x2a9   : > { %1117 = vrot.lane.b32.xlu1 %v1060_v48, %s2465_s17  ;;  %1278 = vrot.lane.b32.xlu0 %v1221_v37, %s2465_s17  ;;  %v1629_v48 = vsel %vm688_vm3, %v4506_v49, %v4505_v45  ;;  %v4509_v45 = vrot.slane %v3074_v55, 3  ;;  %v1230_v55 = vsel %vm1219_vm4, %v1207_v38, %v4510_v13  ;;  %v1619_v38 = vsel %vm688_vm3, %v1615_v47, %v1616_v63 }
 0x2aa   : > { %v1059_v47 = vsel %vm688_vm3, %v1057_v57, %v1058_v1 }
 0x2ab   : > { %v3469_v54 = vpop.permute.xlu1 %1568  ;;  %v3471_v15 = vpop.permute.xlu0 %1011 }
 0x2ad   : > { %939 = vrot.lane.b32.xlu0 %v909_v53, %s2465_s17  ;;  %1656 = vrot.lane.b32.xlu1 %v1629_v48, %s2466_s18  ;;  %v1789_v53 = vsel %vm1219_vm4, %v4509_v45, %v4508_v6  ;;  %v4512_v6 = vrot.slane %v3082_v0, 4 }
 0x2af   : > { %v3487_v37 = vpop.permute.xlu1 %1728  ;;  %v3489_v27 = vpop.permute.xlu0 %1570 }
 0x2b1   : > { %1099 = vrot.lane.b32.xlu0 %v1069_v31, %s2465_s17  ;;  %1816 = vrot.lane.b32.xlu1 %v1789_v53, %s2466_s18  ;;  %v1950_v31 = vsel %vm1938_vm5, %v4512_v6, %v4511_v41  ;;  %v4513_v53 = vrot.slane %v2884_v17, 2  ;;  %v1936_v41 = vrot.slane %v3235_v28, 4  ;;  %v4514_v6 = vrot.slane %v3090_v2, 3 }
 0x2b2   : > { %v898_v28 = vrot.slane %v3267_v30, 1  ;;  %v1607_v30 = vrot.slane %v3287_v19, 2  ;;  %v1617_v19 = vrot.slane %v3297_v23, 2  ;;  %v1927_v23 = vrot.slane %v3285_v10, 4 }
 0x2b3   : > { %v3505_v49 = vpop.permute.xlu1 %1171  ;;  %v3507_v48 = vpop.permute.xlu0 %1730  ;;  %v1074_v0 = vsel %vm688_vm3, %v1058_v1, %v4513_v53  ;;  %v1779_v17 = vsel %vm1219_vm4, %v4514_v6, %v1776_v42  ;;  %v1940_v2 = vsel %vm1938_vm5, %v4515_v4, %v1936_v41  ;;  %v4516_v53 = vrot.slane %v2892_v20, 3 }
 0x2b4   : > { %v914_v6 = vsel %vm591_vm2, %v898_v28, %v4517_v32  ;;  %v4518_v20 = vrot.slane %v3136_v22, 3  ;;  %v4523_v10 = vrot.slane %v3199_v18, 4 }
 0x2b5   : > { %1260 = vrot.lane.b32.xlu0 %v1230_v55, %s2465_s17  ;;  %1977 = vrot.lane.b32.xlu1 %v1950_v31, %s2466_s18  ;;  %v1235_v57 = vsel %vm1219_vm4, %v1218_v9, %v4516_v53  ;;  %v4520_v53 = vrot.slane %v3158_v11, 2  ;;  %v4522_v11 = vrot.slane %v3178_v16, 3 }
 0x2b6   : > { %v1949_v16 = vsel %vm1938_vm5, %v4523_v10, %v1927_v23 }
 0x2b7   : > { %v3523_v45 = vpop.permute.xlu1 %1890  ;;  %v3525_v52 = vpop.permute.xlu0 %853 }
 0x2b9   : > { %1676 = vrot.lane.b32.xlu1 %v1619_v38, %s2466_s18  ;;  %1121 = vrot.lane.b32.xlu0 %v1074_v0, %s2465_s17 }
 0x2bb   : > { %v3536_v13 = vpop.permute.xlu1 %1173  ;;  %v3538_v55 = vpop.permute.xlu0 %1013 }
 0x2bd   : > { %1836 = vrot.lane.b32.xlu1 %v1779_v17, %s2466_s18  ;;  %1119 = vrot.lane.b32.xlu0 %v1059_v47, %s2465_s17  ;;  %v1220_v17 = vsel %vm1219_vm4, %v4518_v20, %v1218_v9  ;;  %v1628_v9 = vsel %vm688_vm3, %v4520_v53, %v1607_v30  ;;  %v1937_v53 = vrot.slane %v3329_v35, 4 }
 0x2bf   : > { %v3550_v31 = vpop.permute.xlu1 %1572  ;;  %v3552_v38 = vpop.permute.xlu0 %1732  ;;  %v1939_v35 = vsel %vm1938_vm5, %v1936_v41, %v1937_v53 }
 0x2c1   : > { %1997 = vrot.lane.b32.xlu1 %v1940_v2, %s2466_s18  ;;  %1282 = vrot.lane.b32.xlu0 %v1235_v57, %s2465_s17  ;;  %v4519_v2 = vrot.slane %v3176_v7, 1  ;;  %v4521_v7 = vrot.slane %v2906_v25, 2  ;;  %v1618_v25 = vsel %vm688_vm3, %v1616_v63, %v1617_v19 }
 0x2c3   : > { %v3565_v1 = vpop.permute.xlu1 %1892  ;;  %v3567_v0 = vpop.permute.xlu0 %1490  ;;  %v899_v22 = vsel %vm591_vm2, %v4519_v2, %v898_v28  ;;  %v1633_v21 = vsel %vm688_vm3, %v1617_v19, %v4521_v7  ;;  %v1788_v28 = vsel %vm1219_vm4, %v4522_v11, %v1767_v14  ;;  %v1608_v11 = vrot.slane %v3409_v59, 2 }
 0x2c4   : > { %v4528_v59 = vrot.slane %v3215_v5, 1 }
 0x2c5   : > { %961 = vrot.lane.b32.xlu1 %v914_v6, %s2465_s17  ;;  %1280 = vrot.lane.b32.xlu0 %v1220_v17, %s2465_s17  ;;  %v1777_v17 = vrot.slane %v3313_v33, 3 }
 0x2c7   : > { %v3580_v47 = vpop.permute.xlu1 %1488  ;;  %v3582_v4 = vpop.permute.xlu0 %1111  ;;  %v1778_v33 = vsel %vm1219_vm4, %v1776_v42, %v1777_v17  ;;  %v4526_v42 = vld [vmem:[#allocation25_spill] sm:$0xff] }
 0x2c9   : > { %959 = vrot.lane.b32.xlu1 %v899_v22, %s2465_s17  ;;  %1658 = vrot.lane.b32.xlu0 %v1628_v9, %s2466_s18  ;;  %v4524_v9 = vld [vmem:[#allocation24_spill] sm:$0xff] }
 0x2ca   : > { %v4525_v7 = vrot.slane %v4524_v9, 3 }
 0x2cb   : > { %v3596_v57 = vpop.permute.xlu1 %1492  ;;  %v3598_v32 = vpop.permute.xlu0 %1650 }
 0x2cc   : > { %v1793_v18 = vsel %vm1219_vm4, %v1777_v17, %v4525_v7  ;;  %v1209_v7 = vrot.slane %v3363_v44, 3  ;;  %v890_v44 = vrot.slane %v3437_v60, 1  ;;  %v4532_v60 = vld [vmem:[#allocation5_spill] sm:$0xff] }
 0x2cd   : > { %1680 = vrot.lane.b32.xlu1 %v1633_v21, %s2466_s18  ;;  %1818 = vrot.lane.b32.xlu0 %v1788_v28, %s2466_s18  ;;  %v889_v21 = vrot.slane %v3331_v26, 1  ;;  %v4527_v28 = vrot.slane %v4526_v42, 4  ;;  %v1768_v26 = vrot.slane %v3423_v58, 3  ;;  %v4529_v58 = vrot.slane %v3233_v29, 2 }
 0x2cf   : > { %v932_v6 = vpop.permute.xlu1 %931  ;;  %v3611_v20 = vpop.permute.xlu0 %1810  ;;  %v908_v41 = vsel %vm591_vm2, %v4528_v59, %v889_v21 }
 0x2d1   : > { %1678 = vrot.lane.b32.xlu1 %v1618_v25, %s2466_s18  ;;  %1979 = vrot.lane.b32.xlu0 %v1949_v16, %s2466_s18  ;;  %v1954_v25 = vsel %vm1938_vm5, %v1937_v53, %v4527_v28  ;;  %v1049_v16 = vrot.slane %v3347_v24, 2  ;;  %v4446_v24 = vrot.slane %v3379_v51, 4  ;;  %v4530_v28 = vrot.slane %v3251_v12, 3 }
 0x2d3   : > { %v1092_v2 = vpop.permute.xlu1 %1091  ;;  %v3622_v22 = vpop.permute.xlu0 %1670  ;;  %v1068_v5 = vsel %vm688_vm3, %v4529_v58, %v1049_v16  ;;  %v1229_v29 = vsel %vm1219_vm4, %v4530_v28, %v1209_v7  ;;  %v4533_v28 = vld [vmem:[#allocation3_spill] sm:$0xff] }
 0x2d5   : > { %1838 = vrot.lane.b32.xlu1 %v1778_v33, %s2466_s18  ;;  %1840 = vrot.lane.b32.xlu0 %v1793_v18, %s2466_s18  ;;  %v1627_v33 = vsel %vm688_vm3, %v1607_v30, %v1608_v11  ;;  %v1787_v18 = vsel %vm1219_vm4, %v1767_v14, %v1768_v26  ;;  %v1948_v14 = vsel %vm1938_vm5, %v1927_v23, %v4446_v24 }
 0x2d6   : > { %v907_v23 = vsel %vm591_vm2, %v889_v21, %v890_v44 }
 0x2d7   : > { %v952_v63 = vpop.permute.xlu1 %951  ;;  %v3633_v19 = vpop.permute.xlu0 %1971 }
 0x2d8   : > { %v989_v58 = vadd.f32 %v952_v63, %v4532_v60  ;;  %v891_v63 = vrot.slane %v3453_v3, 1 }
 0x2d9   : > { %1999 = vrot.lane.b32.xlu1 %v1939_v35, %s2466_s18  ;;  %2001 = vrot.lane.b32.xlu0 %v1954_v25, %s2466_s18  ;;  %v4531_v25 = vld [vmem:[#allocation2_spill] sm:$0xff] }
 0x2da   : > { %v979_v59 = vadd.f32 %v932_v6, %v4531_v25  ;;  %v4534_v6 = vrot.slane %v3395_v46, 3 }
 0x2db   : > { %v1253_v17 = vpop.permute.xlu1 %1252  ;;  %v3645_v10 = vpop.permute.xlu0 %1830 }
 0x2dd   : > { %941 = vrot.lane.b32.xlu1 %v908_v41, %s2465_s17  ;;  %1660 = vrot.lane.b32.xlu0 %v1627_v33, %s2466_s18  ;;  %v1050_v41 = vrot.slane %v3451_v62, 2  ;;  %v1139_v33 = vadd.f32 %v1092_v2, %v979_v59  ;;  %v3695_v62 = vadd.s32 8, %v2607_v8 }
 0x2df   : > { %v1273_v53 = vpop.permute.xlu1 %1272  ;;  %v3657_v9 = vpop.permute.xlu0 %1991  ;;  %v1067_v24 = vsel %vm688_vm3, %v1049_v16, %v1050_v41  ;;  %vm1336_vm6 = vcmp.lt.s32.totalorder %v3695_v62, 13  ;;  %vm2055_vm8 = vcmp.lt.s32.totalorder %v3695_v62, 12 }
 0x2e1   : > { %1101 = vrot.lane.b32.xlu1 %v1068_v5, %s2465_s17  ;;  %1820 = vrot.lane.b32.xlu0 %v1787_v18, %s2466_s18  ;;  %v1609_v18 = vrot.slane %v3469_v54, 2 }
 0x2e3   : > { %v954_v30 = vpop.permute.xlu1 %953  ;;  %v934_v35 = vpop.permute.xlu0 %933 }
 0x2e4   : > { %v980_v42 = vadd.f32 %v934_v35, %v4533_v28  ;;  %v1149_v35 = vadd.f32 %v3582_v4, %v989_v58 }
 0x2e5   : > { %1262 = vrot.lane.b32.xlu1 %v1229_v29, %s2465_s17  ;;  %1981 = vrot.lane.b32.xlu0 %v1948_v14, %s2466_s18  ;;  %v1228_v29 = vsel %vm1219_vm4, %v1209_v7, %v4534_v6  ;;  %v1300_v14 = vadd.f32 %v1253_v17, %v1139_v33  ;;  %v1769_v17 = vrot.slane %v3487_v37, 3  ;;  %v4535_v7 = vld [vmem:[#allocation7_spill] sm:$0xff] }
 0x2e6   : > { %v990_v33 = vadd.f32 %v954_v30, %v4535_v7  ;;  %v1929_v30 = vrot.slane %v3411_v50, 4 }
 0x2e7   : > { %v1114_v12 = vpop.permute.xlu1 %1113  ;;  %v1094_v5 = vpop.permute.xlu0 %1093 }
 0x2e8   : > { %v1140_v2 = vadd.f32 %v1094_v5, %v980_v42  ;;  %v1626_v42 = vsel %vm688_vm3, %v1608_v11, %v1609_v18  ;;  %v4536_v5 = vld [vmem:[#allocation18_spill] sm:$0xff]  ;;  %v1150_v4 = vadd.f32 %v1114_v12, %v990_v33  ;;  %v906_v11 = vsel %vm591_vm2, %v890_v44, %v891_v63 }
 0x2e9   : > { %943 = vrot.lane.b32.xlu1 %v907_v23, %s2465_s17  ;;  %1264 = vrot.lane.b32.xlu0 %v1228_v29, %s2465_s17  ;;  %v1319_v6 = vadd.f32 %v4536_v5, %v1300_v14  ;;  %v1310_v29 = vadd.f32 %v1273_v53, %v1149_v35  ;;  %v1051_v53 = vrot.slane %v3471_v15, 2  ;;  %v1786_v12 = vsel %vm1219_vm4, %v1768_v26, %v1769_v17  ;;  %v4549_v15 = vld [vmem:[#allocation22_spill] sm:$0xff] }
 0x2eb   : > { %v3699_v59 = vpop.permute.xlu1 %1672  ;;  %v1255_v21 = vpop.permute.xlu0 %1254  ;;  %v1354_v35 = vsel %vm1353_vm7, %v1319_v6, -inf  ;;  %v4538_v6 = vrot.slane %v3379_v51, 4 }
 0x2ec   : > { %v1301_v23 = vadd.f32 %v1255_v21, %v1140_v2  ;;  %v1329_v21 = vadd.f32 %v4536_v5, %v1310_v29 }
 0x2ed   : > { %1103 = vrot.lane.b32.xlu1 %v1067_v24, %s2465_s17  ;;  %1662 = vrot.lane.b32.xlu0 %v1626_v42, %s2466_s18  ;;  %v4537_v42 = vld [vmem:[#allocation29_spill] sm:$0xff]  ;;  %v1947_v29 = vsel %vm1938_vm5, %v4538_v6, %v1929_v30 }
 0x2ee   : > { %v1320_v16 = vadd.f32 %v4536_v5, %v1301_v23 }
 0x2ef   : > { %v1833_v58 = vpop.permute.xlu1 %1832  ;;  %v1275_v2 = vpop.permute.xlu0 %1274 }
 0x2f0   : > { %v1338_v24 = vsel %vm1336_vm6, %v1320_v16, -1e+30  ;;  %v1311_v14 = vadd.f32 %v1275_v2, %v1150_v4  ;;  %v1522_v4 = vadd.f32 %v4537_v42, %v4531_v25  ;;  %v4447_v2 = vrot.slane %v3505_v49, 3 }
 0x2f1   : > { %v1355_v33 = vsel %vm1353_vm7, %v1338_v24, -inf  ;;  %1822 = vrot.lane.b32.xlu0 %v1786_v12, %s2466_s18  ;;  %945 = vrot.lane.b32.xlu1 %v906_v11, %s2465_s17  ;;  %v892_v11 = vrot.slane %v3525_v52, 1  ;;  %v4539_v52 = vld [vmem:[#allocation32_spill] sm:$0xff] }
 0x2f2   : > { %v3731_v44 = vmax.f32 %v1354_v35, %v1355_v33  ;;  %v1330_v23 = vadd.f32 %v4536_v5, %v1311_v14  ;;  %v1066_v14 = vsel %vm688_vm3, %v1050_v41, %v1051_v53  ;;  %v1698_v12 = vadd.f32 %v3598_v32, %v1522_v4 }
 0x2f3   : > { %v3736_v16 = vpop.permute.xlu1 %1115  ;;  %v1653_v26 = vpop.permute.xlu0 %1652  ;;  %v1399_v35 = vsel %vm1353_vm7, %v1329_v21, -inf  ;;  %v1523_v33 = vadd.f32 %v4539_v52, %v4533_v28  ;;  %v1610_v41 = vrot.slane %v3489_v27, 2 }
 0x2f4   : > { %v1348_v24 = vsel %vm1336_vm6, %v1330_v23, -1e+30  ;;  %v4540_v23 = vld [vmem:[#allocation30_spill] sm:$0xff]  ;;  %v1858_v32 = vadd.f32 %v3611_v20, %v1698_v12 }
 0x2f5   : > { %v1400_v51 = vsel %vm1353_vm7, %v1348_v24, -inf  ;;  %1983 = vrot.lane.b32.xlu0 %v1947_v29, %s2466_s18  ;;  %1105 = vrot.lane.b32.xlu1 %v1066_v14, %s2465_s17  ;;  %v1532_v6 = vadd.f32 %v4540_v23, %v4532_v60  ;;  %v1699_v24 = vadd.f32 %v1653_v26, %v1523_v33  ;;  %v4541_v29 = vrot.slane %v3395_v46, 3  ;;  %v4544_v26 = vld [vmem:[#allocation34_spill] sm:$0xff] }
 0x2f6   : > { %v3759_v42 = vmax.f32 %v1399_v35, %v1400_v51  ;;  %v4542_v35 = vld [vmem:[#allocation20_spill] sm:$0xff]  ;;  %v2019_v20 = vadd.f32 %v3633_v19, %v1858_v32  ;;  %v1533_v12 = vadd.f32 %v4544_v26, %v4535_v7  ;;  %v1770_v33 = vrot.slane %v3507_v48, 3 }
 0x2f7   : > { %v3765_v4 = vpop.permute.xlu1 %1276  ;;  %v1813_v21 = vpop.permute.xlu0 %1812  ;;  %v1227_v14 = vsel %vm1219_vm4, %v4541_v29, %v4447_v2  ;;  %v4543_v51 = vrot.slane %v4542_v35, 1  ;;  %v1708_v23 = vadd.f32 %v3622_v22, %v1532_v6  ;;  %v1625_v22 = vsel %vm688_vm3, %v1609_v18, %v1610_v41 }
 0x2f8   : > { %v1859_v46 = vadd.f32 %v1813_v21, %v1699_v24  ;;  %v1052_v19 = vrot.slane %v3538_v55, 2  ;;  %v1709_v6 = vadd.f32 %v3699_v59, %v1533_v12  ;;  %v905_v48 = vsel %vm591_vm2, %v891_v63, %v892_v11 }
 0x2f9   : > { %v904_v52 = vsel %vm591_vm2, %v892_v11, %v4543_v51  ;;  %1266 = vrot.lane.b32.xlu1 %v1227_v14, %s2465_s17  ;;  %v1868_v29 = vadd.f32 %v3645_v10, %v1708_v23  ;;  %v4545_v10 = vld [vmem:[#allocation19_spill] sm:$0xff]  ;;  %v1930_v18 = vrot.slane %v3523_v45, 4  ;;  %v4546_v11 = vld [vmem:[#allocation21_spill] sm:$0xff] }
 0x2fa   : > { %949 = vrot.lane.b32.xlu0 %v904_v52, %s2465_s17  ;;  %v2038_v21 = vadd.f32 %v4545_v10, %v2019_v20  ;;  %v1869_v54 = vadd.f32 %v1833_v58, %v1709_v6  ;;  %v4547_v14 = vrot.slane %v4546_v11, 2  ;;  %v4548_v6 = vld [vmem:[#allocation4_spill] sm:$0xff] }
 0x2fb   : > { %v3785_v35 = vpop.permute.xlu1 %1654  ;;  %v1974_v2 = vpop.permute.xlu0 %1973  ;;  %v2029_v24 = vadd.f32 %v3657_v9, %v1868_v29  ;;  %v1785_v9 = vsel %vm1219_vm4, %v1769_v17, %v1770_v33  ;;  %v1212_v17 = vrot.slane %v3536_v13, 3  ;;  %v1611_v29 = vrot.slane %v3550_v31, 2 }
 0x2fc   : > { %v2020_v32 = vadd.f32 %v1974_v2, %v1859_v46  ;;  %v1064_v58 = vsel %vm688_vm3, %v1052_v19, %v4547_v14  ;;  %v2073_v51 = vsel %vm2072_vm9, %v2038_v21, -inf  ;;  %v1946_v46 = vsel %vm1938_vm5, %v1929_v30, %v1930_v18  ;;  %v4552_v14 = vld [vmem:[#allocation9_spill] sm:$0xff] }
 0x2fd   : > { %1664 = vrot.lane.b32.xlu1 %v1625_v22, %s2466_s18  ;;  %v2048_v52 = vadd.f32 %v4545_v10, %v2029_v24  ;;  %v1065_v13 = vsel %vm688_vm3, %v1051_v53, %v1052_v19  ;;  %v1771_v24 = vrot.slane %v3552_v38, 3  ;;  %v1624_v19 = vsel %vm688_vm3, %v1610_v41, %v1611_v29 }
 0x2fe   : > { %947 = vrot.lane.b32.xlu0 %v905_v48, %s2465_s17  ;;  %v2039_v55 = vadd.f32 %v4545_v10, %v2020_v32  ;;  %v4551_v38 = vrot.slane %v3505_v49, 3  ;;  %v4555_v49 = vld [vmem:[#allocation6_spill] sm:$0xff] }
 0x2ff   : > { %v3806_v3 = vpop.permute.xlu1 %1814  ;;  %v1994_v59 = vpop.permute.xlu0 %1993  ;;  %v2118_v48 = vsel %vm2072_vm9, %v2048_v52, -inf  ;;  %v1784_v11 = vsel %vm1219_vm4, %v1770_v33, %v1771_v24  ;;  %v4556_v33 = vld [vmem:[#allocation33_spill] sm:$0xff] }
 0x300   : > { %v2057_v63 = vsel %vm2055_vm8, %v2039_v55, -1e+30  ;;  %v2030_v2 = vadd.f32 %v1994_v59, %v1869_v54  ;;  %v4550_v55 = vrot.slane %v4549_v15, 3 }
 0x301   : > { %v2074_v23 = vsel %vm2072_vm9, %v2057_v63, -inf  ;;  %1824 = vrot.lane.b32.xlu1 %v1785_v9, %s2466_s18  ;;  %v1226_v9 = vsel %vm1219_vm4, %v4551_v38, %v1212_v17 }
 0x302   : > { %1109 = vrot.lane.b32.xlu0 %v1064_v58, %s2465_s17  ;;  %v3823_v20 = vmax.f32 %v2073_v51, %v2074_v23  ;;  %v2049_v37 = vadd.f32 %v4545_v10, %v2030_v2  ;;  %v1225_v53 = vsel %vm1219_vm4, %v1212_v17, %v4550_v55  ;;  %v4553_v51 = vld [vmem:[#allocation23_spill] sm:$0xff]  ;;  %v1931_v55 = vrot.slane %v3565_v1, 4 }
 0x303   : > { %v3827_v26 = vpop.permute.xlu1 %1975  ;;  %v936_v12 = vpop.permute.xlu0 %935  ;;  %v4554_v52 = vrot.slane %v4553_v51, 2 }
 0x304   : > { %v2067_v22 = vsel %vm2055_vm8, %v2049_v37, -1e+30  ;;  %v981_v32 = vadd.f32 %v936_v12, %v4548_v6  ;;  %v1534_v37 = vadd.f32 %v4556_v33, %v4552_v14 }
 0x305   : > { %v2119_v21 = vsel %vm2072_vm9, %v2067_v22, -inf  ;;  %1985 = vrot.lane.b32.xlu1 %v1946_v46, %s2466_s18  ;;  %v1623_v23 = vsel %vm688_vm3, %v1611_v29, %v4554_v52  ;;  %v4562_v52 = vld [vmem:[#allocation27_spill] sm:$0xff] }
 0x306   : > { %1107 = vrot.lane.b32.xlu0 %v1065_v13, %s2465_s17  ;;  %v3847_v50 = vmax.f32 %v2118_v48, %v2119_v21  ;;  %v4557_v13 = vld [vmem:[#allocation26_spill] sm:$0xff]  ;;  %v1357_v21 = vrot.slane %v3731_v44, 4 }
 0x307   : > { %v3849_v31 = vpop.permute.xlu1 %1834  ;;  %v1096_v30 = vpop.permute.xlu0 %1095  ;;  %v4558_v48 = vrot.slane %v4557_v13, 3 }
 0x308   : > { %v1141_v54 = vadd.f32 %v1096_v30, %v981_v32 }
 0x309   : > { %1270 = vrot.lane.b32.xlu1 %v1225_v53, %s2465_s17  ;;  %v1783_v29 = vsel %vm1219_vm4, %v1771_v24, %v4558_v48  ;;  %v4560_v24 = vld [vmem:[#allocation8_spill] sm:$0xff]  ;;  %vm745_vm4 = vcmp.lt.s32.totalorder %v3695_v62, 14 }
 0x30a   : > { %1666 = vrot.lane.b32.xlu0 %v1624_v19, %s2466_s18  ;;  %v4559_v19 = vld [vmem:[#allocation11_spill] sm:$0xff] }
 0x30b   : > { %v3862_v59 = vpop.permute.xlu1 %1995  ;;  %v1257_v63 = vpop.permute.xlu0 %1256 }
 0x30c   : > { %v1302_v2 = vadd.f32 %v1257_v63, %v1141_v54 }
 0x30d   : > { %1268 = vrot.lane.b32.xlu1 %v1226_v9, %s2465_s17  ;;  %v4561_v9 = vld [vmem:[#allocation12_spill] sm:$0xff] }
 0x30e   : > { %1826 = vrot.lane.b32.xlu0 %v1784_v11, %s2466_s18  ;;  %v1321_v38 = vadd.f32 %v4536_v5, %v1302_v2  ;;  %v4563_v2 = vrot.slane %v4562_v52, 4 }
 0x30f   : > { %v938_v27 = vpop.permute.xlu1 %937  ;;  %v956_v41 = vpop.permute.xlu0 %955 }
 0x310   : > { %v991_v58 = vadd.f32 %v956_v41, %v4552_v14  ;;  %v982_v17 = vadd.f32 %v938_v27, %v4555_v49  ;;  %v1358_v27 = vmax.f32 %v3731_v44, %v1357_v21  ;;  %v1363_v33 = vsel %vm1353_vm7, %v1321_v38, -inf  ;;  %v4564_v44 = vld [vmem:[#allocation16_spill] sm:$0xff] }
 0x311   : > { %1668 = vrot.lane.b32.xlu1 %v1623_v23, %s2466_s18  ;;  %v1944_v23 = vsel %vm1938_vm5, %v1931_v55, %v4563_v2 }
 0x312   : > { %533 = vrot.lane.b32.xlu0 %v4555_v49, %s2466_s18  ;;  %v1151_v30 = vadd.f32 %v3736_v16, %v991_v58  ;;  %v1359_v13 = vrot.slane %v1358_v27, 2 }
 0x313   : > { %v1098_v12 = vpop.permute.xlu1 %1097  ;;  %v1675_v46 = vpop.permute.xlu0 %1674 }
 0x314   : > { %v1142_v22 = vadd.f32 %v1098_v12, %v982_v17  ;;  %v3883_v32 = vadd.f32 %v1675_v46, %v1534_v37  ;;  %v1312_v16 = vadd.f32 %v3765_v4, %v1151_v30  ;;  %v1525_v4 = vadd.f32 %v3345_v40, %v4555_v49  ;;  %v4565_v46 = vld [vmem:[#allocation35_spill] sm:$0xff] }
 0x315   : > { %1828 = vrot.lane.b32.xlu1 %v1783_v29, %s2466_s18  ;;  %v1945_v30 = vsel %vm1938_vm5, %v1930_v18, %v1931_v55  ;;  %vm762_vm5 = vcmask 130048  }
 0x316   : > { %527 = vrot.lane.b32.xlu0 %v4531_v25, %s2466_s18  ;;  %v1331_v48 = vadd.f32 %v4536_v5, %v1312_v16 }
 0x317   : > { %v1259_v54 = vpop.permute.xlu1 %1258  ;;  %v958_v15 = vpop.permute.xlu0 %957 }
 0x318   : > { %v1303_v53 = vadd.f32 %v1259_v54, %v1142_v22  ;;  %v992_v63 = vadd.f32 %v958_v15, %v4559_v19  ;;  %v1524_v22 = vadd.f32 %v4565_v46, %v4548_v6  ;;  %v1408_v55 = vsel %vm1353_vm7, %v1331_v48, -inf }
 0x319   : > { %535 = vrot.lane.b32.xlu1 %v4560_v24, %s2466_s18 }
 0x31a   : > { %539 = vrot.lane.b32.xlu0 %v4561_v9, %s2466_s18  ;;  %v1322_v11 = vadd.f32 %v4536_v5, %v1303_v53 }
 0x31b   : > { %v1118_v41 = vpop.permute.xlu1 %1117  ;;  %v1279_v58 = vpop.permute.xlu0 %1278 }
 0x31c   : > { %v1340_v1 = vsel %vm1336_vm6, %v1322_v11, -1e+30  ;;  %v1152_v51 = vadd.f32 %v1118_v41, %v992_v63  ;;  %v1700_v63 = vadd.f32 %v3785_v35, %v1524_v22  ;;  %v1360_v11 = vmax.f32 %v1358_v27, %v1359_v13 }
 0x31d   : > { %v1364_v37 = vsel %vm1353_vm7, %v1340_v1, -inf  ;;  %1989 = vrot.lane.b32.xlu1 %v1944_v23, %s2466_s18  ;;  %v4566_v23 = vld [vmem:[#allocation10_spill] sm:$0xff]  ;;  %v1535_v13 = vadd.f32 %v3361_v43, %v4559_v19 }
 0x31e   : > { %543 = vrot.lane.b32.xlu0 %v4564_v44, %s2466_s18  ;;  %v1365_v17 = vmax.f32 %v1363_v33, %v1364_v37  ;;  %v1313_v12 = vadd.f32 %v1279_v58, %v1152_v51  ;;  %v1860_v18 = vadd.f32 %v3806_v3, %v1700_v63  ;;  %v1361_v27 = vrot.slane %v1360_v11, 1 }
 0x31f   : > { %v1657_v29 = vpop.permute.xlu1 %1656  ;;  %v940_v21 = vpop.permute.xlu0 %939  ;;  %v2076_v33 = vrot.slane %v3823_v20, 4 }
 0x320   : > { %v1366_v54 = vrot.slane %v1365_v17, 4  ;;  %v1332_v15 = vadd.f32 %v4536_v5, %v1313_v12  ;;  %v1701_v53 = vadd.f32 %v1657_v29, %v1525_v4  ;;  %v983_v40 = vadd.f32 %v940_v21, %v4560_v24 }
 0x321   : > { %1987 = vrot.lane.b32.xlu1 %v1945_v30, %s2466_s18  ;;  %v2021_v2 = vadd.f32 %v3827_v26, %v1860_v18  ;;  %v4567_v26 = vld [vmem:[#allocation14_spill] sm:$0xff]  ;;  %v1362_v21 = vmax.f32 %v1360_v11, %v1361_v27  ;;  %v2077_v30 = vmax.f32 %v3823_v20, %v2076_v33  ;;  %v4568_v27 = vld [vmem:[#allocation17_spill] sm:$0xff] }
 0x322   : > { %628 = vrot.lane.b32.xlu0 %v4548_v6, %s2467_s19  ;;  %v1367_v38 = vmax.f32 %v1365_v17, %v1366_v54  ;;  %v1350_v45 = vsel %vm1336_vm6, %v1332_v15, -1e+30 }
 0x323   : > { %v1409_v16 = vsel %vm1353_vm7, %v1350_v45, -inf  ;;  %v1817_v41 = vpop.permute.xlu1 %1816  ;;  %v1100_v58 = vpop.permute.xlu0 %1099  ;;  %v2040_v22 = vadd.f32 %v4545_v10, %v2021_v2  ;;  %v2078_v11 = vrot.slane %v2077_v30, 2 }
 0x324   : > { %v1368_v1 = vrot.slane %v1367_v38, 2  ;;  %v3935_v35 = vmax.f32 %v1408_v55, %v1409_v16  ;;  %v1861_v51 = vadd.f32 %v1817_v41, %v1701_v53  ;;  %v1143_v52 = vadd.f32 %v1100_v58, %v983_v40 }
 0x325   : > { %537 = vrot.lane.b32.xlu1 %v4566_v23, %s2466_s18  ;;  %v2082_v63 = vsel %vm2072_vm9, %v2040_v22, -inf }
 0x326   : > { %632 = vrot.lane.b32.xlu0 %v4560_v24, %s2467_s19  ;;  %v1369_v3 = vmax.f32 %v1367_v38, %v1368_v1  ;;  %v1870_v38 = vadd.f32 %v3849_v31, %v3883_v32  ;;  %v2079_v32 = vmax.f32 %v2077_v30, %v2078_v11  ;;  %v1526_v30 = vadd.f32 %v3315_v39, %v4560_v24  ;;  %v4570_v11 = vld [vmem:[#allocation13_spill] sm:$0xff] }
 0x327   : > { %v1978_v37 = vpop.permute.xlu1 %1977  ;;  %v1261_v4 = vpop.permute.xlu0 %1260 }
 0x328   : > { %v1370_v17 = vrot.slane %v1369_v3, 1  ;;  %v2022_v12 = vadd.f32 %v1978_v37, %v1861_v51  ;;  %v3943_v46 = vadd.f32 %v1261_v4, %v1143_v52  ;;  %v2031_v58 = vadd.f32 %v3862_v59, %v1870_v38 }
 0x329   : > { %541 = vrot.lane.b32.xlu1 %v4567_v26, %s2466_s18  ;;  %v2080_v37 = vrot.slane %v2079_v32, 1 }
 0x32a   : > { %547 = vrot.lane.b32.xlu0 %v4532_v60, %s2466_s18  ;;  %v1371_v48 = vmax.f32 %v1369_v3, %v1370_v17  ;;  %v2041_v29 = vadd.f32 %v4545_v10, %v2022_v12  ;;  %v2050_v3 = vadd.f32 %v4545_v10, %v2031_v58 }
 0x32b   : > { %v1677_v54 = vpop.permute.xlu1 %1676  ;;  %v1122_v15 = vpop.permute.xlu0 %1121 }
 0x32c   : > { %v2059_v53 = vsel %vm2055_vm8, %v2041_v29, -1e+30  ;;  %v1711_v40 = vadd.f32 %v1677_v54, %v1535_v13  ;;  %v3965_v20 = vsel %vm2153_vm10, %v1371_v48, %v1362_v21  ;;  %v4569_v13 = vld [vmem:[#allocation15_spill] sm:$0xff]  ;;  %v2127_v29 = vsel %vm2072_vm9, %v2050_v3, -inf }
 0x32d   : > { %v2083_v43 = vsel %vm2072_vm9, %v2059_v53, -inf  ;;  %626 = vrot.lane.b32.xlu1 %v4533_v28, %s2467_s19  ;;  %v1537_v39 = vadd.f32 %v3377_v61, %v4569_v13  ;;  %v1536_v61 = vadd.f32 %v3393_v34, %v4570_v11 }
 0x32e   : > { %634 = vrot.lane.b32.xlu0 %v4566_v23, %s2467_s19  ;;  %v2084_v45 = vmax.f32 %v2082_v63, %v2083_v43  ;;  %v2081_v63 = vmax.f32 %v2079_v32, %v2080_v37 }
 0x32f   : > { %v1837_v18 = vpop.permute.xlu1 %1836  ;;  %v1120_v55 = vpop.permute.xlu0 %1119 }
 0x330   : > { %v2085_v16 = vrot.slane %v2084_v45, 4  ;;  %v1871_v41 = vadd.f32 %v1837_v18, %v1711_v40 }
 0x331   : > { %630 = vrot.lane.b32.xlu1 %v4555_v49, %s2467_s19 }
 0x332   : > { %549 = vrot.lane.b32.xlu0 %v4535_v7, %s2466_s18  ;;  %v2086_v31 = vmax.f32 %v2084_v45, %v2085_v16 }
 0x333   : > { %v1998_v1 = vpop.permute.xlu1 %1997  ;;  %v1283_v51 = vpop.permute.xlu0 %1282 }
 0x334   : > { %v2087_v52 = vrot.slane %v2086_v31, 2  ;;  %v2032_v2 = vadd.f32 %v1998_v1, %v1871_v41 }
 0x335   : > { %545 = vrot.lane.b32.xlu1 %v4568_v27, %s2466_s18 }
 0x336   : > { %638 = vrot.lane.b32.xlu0 %v4567_v26, %s2467_s19  ;;  %v2088_v59 = vmax.f32 %v2086_v31, %v2087_v52  ;;  %v2051_v33 = vadd.f32 %v4545_v10, %v2032_v2 }
 0x337   : > { %v962_v4 = vpop.permute.xlu1 %961  ;;  %v1281_v17 = vpop.permute.xlu0 %1280 }
 0x338   : > { %v2089_v12 = vrot.slane %v2088_v59, 1  ;;  %v2069_v22 = vsel %vm2055_vm8, %v2051_v33, -1e+30  ;;  %v994_v48 = vadd.f32 %v962_v4, %v4569_v13 }
 0x339   : > { %v2128_v21 = vsel %vm2072_vm9, %v2069_v22, -inf  ;;  %624 = vrot.lane.b32.xlu1 %v4531_v25, %s2467_s19 }
 0x33a   : > { %553 = vrot.lane.b32.xlu0 %v4559_v19, %s2466_s18  ;;  %v2090_v54 = vmax.f32 %v2088_v59, %v2089_v12  ;;  %v3989_v53 = vmax.f32 %v2127_v29, %v2128_v21  ;;  %v1154_v40 = vadd.f32 %v1122_v15, %v994_v48 }
 0x33b   : > { %v960_v38 = vpop.permute.xlu1 %959  ;;  %v1659_v43 = vpop.permute.xlu0 %1658 }
 0x33c   : > { %v1315_v45 = vadd.f32 %v1283_v51, %v1154_v40  ;;  %v993_v18 = vadd.f32 %v960_v38, %v4570_v11  ;;  %v1702_v16 = vadd.f32 %v1659_v43, %v1526_v30  ;;  %v3997_v41 = vsel %vm2153_vm10, %v2090_v54, %v2081_v63 }
 0x33d   : > { %636 = vrot.lane.b32.xlu1 %v4561_v9, %s2467_s19 }
 0x33e   : > { %642 = vrot.lane.b32.xlu0 %v4568_v27, %s2467_s19  ;;  %v1334_v15 = vadd.f32 %v4536_v5, %v1315_v45  ;;  %v1153_v58 = vadd.f32 %v1120_v55, %v993_v18 }
 0x33f   : > { %v1681_v31 = vpop.permute.xlu1 %1680  ;;  %v1819_v32 = vpop.permute.xlu0 %1818 }
 0x340   : > { %v1314_v1 = vadd.f32 %v1281_v17, %v1153_v58  ;;  %v1713_v51 = vadd.f32 %v1681_v31, %v1537_v39  ;;  %v1352_v52 = vsel %vm1336_vm6, %v1334_v15, -1e+30  ;;  %v1862_v2 = vadd.f32 %v1819_v32, %v1702_v16 }
 0x341   : > { %551 = vrot.lane.b32.xlu1 %v4552_v14, %s2466_s18  ;;  %v1418_v33 = vsel %vm1353_vm7, %v1352_v52, -inf  ;;  %v1527_v15 = vadd.f32 %v3425_v56, %v4566_v23 }
 0x342   : > { %557 = vrot.lane.b32.xlu0 %v4569_v13, %s2466_s18  ;;  %v1333_v3 = vadd.f32 %v4536_v5, %v1314_v1 }
 0x343   : > { %v1679_v55 = vpop.permute.xlu1 %1678  ;;  %v1980_v59 = vpop.permute.xlu0 %1979 }
 0x344   : > { %v1417_v37 = vsel %vm1353_vm7, %v1333_v3, -inf  ;;  %v1712_v4 = vadd.f32 %v1679_v55, %v1536_v61  ;;  %v2023_v17 = vadd.f32 %v1980_v59, %v1862_v2 }
 0x345   : > { %v4013_v12 = vmax.f32 %v1417_v37, %v1418_v33  ;;  %640 = vrot.lane.b32.xlu1 %v4564_v44, %s2467_s19  ;;  %v1323_v33 = vadd.f32 %v4536_v5, %v3943_v46 }
 0x346   : > { %648 = vrot.lane.b32.xlu0 %v4552_v14, %s2467_s19  ;;  %v2042_v56 = vadd.f32 %v4545_v10, %v2023_v17 }
 0x347   : > { %v1839_v22 = vpop.permute.xlu1 %1838  ;;  %v1841_v34 = vpop.permute.xlu0 %1840 }
 0x348   : > { %v1872_v48 = vadd.f32 %v1839_v22, %v1712_v4  ;;  %v1873_v29 = vadd.f32 %v1841_v34, %v1713_v51  ;;  %v2091_v46 = vsel %vm2072_vm9, %v2042_v56, -inf }
 0x349   : > { %555 = vrot.lane.b32.xlu1 %v4570_v11, %s2466_s18 }
 0x34a   : > { %652 = vrot.lane.b32.xlu0 %v4570_v11, %s2467_s19 }
 0x34b   : > { %v2000_v21 = vpop.permute.xlu1 %1999  ;;  %v2002_v30 = vpop.permute.xlu0 %2001 }
 0x34c   : > { %v2033_v54 = vadd.f32 %v2000_v21, %v1872_v48  ;;  %v2034_v40 = vadd.f32 %v2002_v30, %v1873_v29  ;;  %v1372_v21 = vsel %vm1353_vm7, %v1323_v33, -inf }
 0x34d   : > { %644 = vrot.lane.b32.xlu1 %v4532_v60, %s2467_s19 }
 0x34e   : > { %v2052_v63 = vadd.f32 %v4545_v10, %v2033_v54  ;;  %v2053_v38 = vadd.f32 %v4545_v10, %v2034_v40 }
 0x34f   : > { %v942_v43 = vpop.permute.xlu1 %941  ;;  %v1661_v45 = vpop.permute.xlu0 %1660 }
 0x350   : > { %v2136_v18 = vsel %vm2072_vm9, %v2052_v63, -inf  ;;  %v2071_v16 = vsel %vm2055_vm8, %v2053_v38, -1e+30  ;;  %v984_v1 = vadd.f32 %v942_v43, %v4566_v23  ;;  %v1703_v51 = vadd.f32 %v1661_v45, %v1527_v15 }
 0x351   : > { %v2137_v39 = vsel %vm2072_vm9, %v2071_v16, -inf  ;;  %646 = vrot.lane.b32.xlu1 %v4535_v7, %s2467_s19 }
 0x352   : > { %v4035_v58 = vmax.f32 %v2136_v18, %v2137_v39 }
 0x353   : > { %v1102_v31 = vpop.permute.xlu1 %1101  ;;  %v1821_v32 = vpop.permute.xlu0 %1820 }
 0x354   : > { %v1144_v52 = vadd.f32 %v1102_v31, %v984_v1  ;;  %v1863_v2 = vadd.f32 %v1821_v32, %v1703_v51 }
 0x355   : > { %650 = vrot.lane.b32.xlu1 %v4559_v19, %s2467_s19 }
 0x357   : > { %v1263_v61 = vpop.permute.xlu1 %1262  ;;  %v1982_v3 = vpop.permute.xlu0 %1981 }
 0x358   : > { %v1305_v55 = vadd.f32 %v1263_v61, %v1144_v52  ;;  %v2024_v59 = vadd.f32 %v1982_v3, %v1863_v2 }
 0x359   : > { %654 = vrot.lane.b32.xlu1 %v4569_v13, %s2467_s19 }
 0x35a   : > { %v1324_v37 = vadd.f32 %v4536_v5, %v1305_v55  ;;  %v2043_v4 = vadd.f32 %v4545_v10, %v2024_v59 }
 0x35b   : > { %v944_v22 = vpop.permute.xlu1 %943  ;;  %v1265_v34 = vpop.permute.xlu0 %1264 }
 0x35c   : > { %v1342_v48 = vsel %vm1336_vm6, %v1324_v37, -1e+30  ;;  %v2061_v29 = vsel %vm2055_vm8, %v2043_v4, -1e+30  ;;  %v985_v39 = vadd.f32 %v944_v22, %v4561_v9 }
 0x35d   : > { %v1373_v17 = vsel %vm1353_vm7, %v1342_v48, -inf  ;;  %v2092_v30 = vsel %vm2072_vm9, %v2061_v29, -inf }
 0x35e   : > { %v1374_v54 = vmax.f32 %v1372_v21, %v1373_v17  ;;  %v2093_v40 = vmax.f32 %v2091_v46, %v2092_v30 }
 0x35f   : > { %v1104_v63 = vpop.permute.xlu1 %1103  ;;  %v1663_v38 = vpop.permute.xlu0 %1662 }
 0x360   : > { %v1375_v43 = vrot.slane %v1374_v54, 4  ;;  %v2094_v45 = vrot.slane %v2093_v40, 4  ;;  %v1145_v51 = vadd.f32 %v1104_v63, %v985_v39 }
 0x362   : > { %v1376_v18 = vmax.f32 %v1374_v54, %v1375_v43  ;;  %v2095_v16 = vmax.f32 %v2093_v40, %v2094_v45  ;;  %v1306_v56 = vadd.f32 %v1265_v34, %v1145_v51  ;;  %v1528_v34 = vadd.f32 %v3439_v36, %v4561_v9 }
 0x363   : > { %v946_v15 = vpop.permute.xlu1 %945  ;;  %v1823_v31 = vpop.permute.xlu0 %1822 }
 0x364   : > { %v1377_v32 = vrot.slane %v1376_v18, 2  ;;  %v2096_v1 = vrot.slane %v2095_v16, 2  ;;  %v986_v33 = vadd.f32 %v946_v15, %v4567_v26  ;;  %v1325_v17 = vadd.f32 %v4536_v5, %v1306_v56 }
 0x366   : > { %v1378_v52 = vmax.f32 %v1376_v18, %v1377_v32  ;;  %v2097_v2 = vmax.f32 %v2095_v16, %v2096_v1  ;;  %v1381_v45 = vsel %vm1353_vm7, %v1325_v17, -inf  ;;  %v1704_v18 = vadd.f32 %v1663_v38, %v1528_v34 }
 0x367   : > { %v1106_v61 = vpop.permute.xlu1 %1105  ;;  %v1984_v3 = vpop.permute.xlu0 %1983  ;;  %v1529_v16 = vadd.f32 %v3580_v47, %v4567_v26 }
 0x368   : > { %v1379_v55 = vrot.slane %v1378_v52, 1  ;;  %v2098_v59 = vrot.slane %v2097_v2, 1  ;;  %v1146_v48 = vadd.f32 %v1106_v61, %v986_v33  ;;  %v1864_v39 = vadd.f32 %v1823_v31, %v1704_v18 }
 0x36a   : > { %v1380_v37 = vmax.f32 %v1378_v52, %v1379_v55  ;;  %v2099_v4 = vmax.f32 %v2097_v2, %v2098_v59  ;;  %v2025_v36 = vadd.f32 %v1984_v3, %v1864_v39 }
 0x36b   : > { %v1267_v29 = vpop.permute.xlu1 %1266 }
 0x36c   : > { %v950_v22 = vpop.permute.xlu0 %949  ;;  %v1307_v21 = vadd.f32 %v1267_v29, %v1146_v48  ;;  %v2177_v46 = vsel %vm2155_vm11, %v1380_v37, %v3965_v20  ;;  %v4062_v30 = vsel %vm2155_vm11, %v2099_v4, %v3997_v41  ;;  %v2044_v56 = vadd.f32 %v4545_v10, %v2025_v36 }
 0x36d   : > { %v988_v33 = vadd.f32 %v950_v22, %v4568_v27 }
 0x36e   : > { %v1326_v54 = vadd.f32 %v4536_v5, %v1307_v21  ;;  %v2100_v22 = vsel %vm2072_vm9, %v2044_v56, -inf }
 0x36f   : > { %v1665_v40 = vpop.permute.xlu1 %1664 }
 0x370   : > { %v948_v63 = vpop.permute.xlu0 %947  ;;  %v1344_v43 = vsel %vm1336_vm6, %v1326_v54, -1e+30  ;;  %v1705_v51 = vadd.f32 %v1665_v40, %v1529_v16  ;;  %v1402_v54 = vrot.slane %v3759_v42, 4 }
 0x371   : > { %v1382_v20 = vsel %vm1353_vm7, %v1344_v43, -inf  ;;  %v987_v3 = vadd.f32 %v948_v63, %v4564_v44  ;;  %v1420_v63 = vrot.slane %v4013_v12, 4 }
 0x372   : > { %v1383_v41 = vmax.f32 %v1381_v45, %v1382_v20  ;;  %v1411_v20 = vrot.slane %v3935_v35, 4 }
 0x373   : > { %v1825_v15 = vpop.permute.xlu1 %1824 }
 0x374   : > { %v1110_v32 = vpop.permute.xlu0 %1109  ;;  %v1384_v1 = vrot.slane %v1383_v41, 4  ;;  %v1865_v2 = vadd.f32 %v1825_v15, %v1705_v51  ;;  %v1403_v51 = vmax.f32 %v3759_v42, %v1402_v54  ;;  %v2444_v54 = vld [vmem:[%s4375_s3] sm:$0xff]  }
 0x375   : > { %v1148_v4 = vadd.f32 %v1110_v32, %v988_v33  ;;  %2397 = vmatpush3.bf16.msra.mxu1 %v2444_v54  ;;  %v2130_v54 = vrot.slane %v3989_v53, 4 }
 0x376   : > { %v1385_v52 = vmax.f32 %v1383_v41, %v1384_v1 }
 0x377   : > { %v1986_v61 = vpop.permute.xlu1 %1985 }
 0x378   : > { %v1108_v55 = vpop.permute.xlu0 %1107  ;;  %v1386_v59 = vrot.slane %v1385_v52, 2  ;;  %v2026_v38 = vadd.f32 %v1986_v61, %v1865_v2  ;;  %v1412_v2 = vmax.f32 %v3935_v35, %v1411_v20  ;;  %v1421_v61 = vmax.f32 %v4013_v12, %v1420_v63 }
 0x379   : > { %v1147_v45 = vadd.f32 %v1108_v55, %v987_v3  ;;  %v1531_v12 = vadd.f32 %v3596_v57, %v4568_v27  ;;  %v2445_v57 = vld [vmem:[%s4375_s3 + $0x8] sm:$0xff]  }
 0x37a   : > { %v1387_v37 = vmax.f32 %v1385_v52, %v1386_v59  ;;  %v2045_v47 = vadd.f32 %v4545_v10, %v2026_v38 }
 0x37b   : > { %v1271_v31 = vpop.permute.xlu1 %1270 }
 0x37c   : > { %v4076_v48 = vpop.permute.xlu0 %1666  ;;  %v1388_v29 = vrot.slane %v1387_v37, 1  ;;  %v2063_v21 = vsel %vm2055_vm8, %v2045_v47, -1e+30  ;;  %v1309_v17 = vadd.f32 %v1271_v31, %v1148_v4  ;;  %v1413_v47 = vrot.slane %v1412_v2, 2 }
 0x37d   : > { %v2101_v34 = vsel %vm2072_vm9, %v2063_v21, -inf }
 0x37e   : > { %v1389_v40 = vmax.f32 %v1387_v37, %v1388_v29  ;;  %v2102_v43 = vmax.f32 %v2100_v22, %v2101_v34  ;;  %v1328_v18 = vadd.f32 %v4536_v5, %v1309_v17  ;;  %v1414_v22 = vmax.f32 %v1412_v2, %v1413_v47 }
 0x37f   : > { %v1269_v16 = vpop.permute.xlu1 %1268 }
 0x380   : > { %v1827_v41 = vpop.permute.xlu0 %1826  ;;  %v2103_v39 = vrot.slane %v2102_v43, 4  ;;  %v1308_v15 = vadd.f32 %v1269_v16, %v1147_v45  ;;  %v1346_v32 = vsel %vm1336_vm6, %v1328_v18, -1e+30  ;;  %v4090_v1 = vsel %vm2157_vm12, %v1389_v40, %v2177_v46 }
 0x381   : > { %v1391_v38 = vsel %vm1353_vm7, %v1346_v32, -inf  ;;  %v1404_v46 = vrot.slane %v1403_v51, 2  ;;  %v1530_v32 = vadd.f32 %v3567_v0, %v4564_v44  ;;  %v2446_v0 = vld [vmem:[%s4375_s3 + $0x10] sm:$0xff]   ;;  %vm2277_vm6 = vcmask 64512  }
 0x382   : > { %v2104_v36 = vmax.f32 %v2102_v43, %v2103_v39  ;;  %v1327_v52 = vadd.f32 %v4536_v5, %v1308_v15  ;;  %v1422_v5 = vrot.slane %v1421_v61, 2  ;;  %v4571_v15 = vmov 0.0  }
 0x383   : > { %v1669_v55 = vpop.permute.xlu1 %1668  ;;  %v1405_v21 = vmax.f32 %v1403_v51, %v1404_v46  ;;  %2398 = vmatprep.subr.bf16.mxu1 %v4571_v15  ;;  %2402 = vmatprep.mubr.msk.bf16.mxu1 %vm2468_vm1, %v4571_v15 }
 0x384   : > { %v4096_v59 = vpop.permute.xlu0 %533  ;;  %v2105_v33 = vrot.slane %v2104_v36, 2  ;;  %v1390_v56 = vsel %vm1353_vm7, %v1327_v52, -inf  ;;  %v1423_v45 = vmax.f32 %v1421_v61, %v1422_v5  ;;  %v1707_v18 = vadd.f32 %v1669_v55, %v1531_v12  ;;  %2399 = vmatpush3.bf16.msra.mxu1 %v2445_v57 }
 0x385   : > { %v1392_v37 = vmax.f32 %v1390_v56, %v1391_v38  ;;  %v578_v20 = vrot.slane %v4096_v59, 1  ;;  %v1406_v51 = vrot.slane %v1405_v21, 1  ;;  %v1706_v38 = vadd.f32 %v4076_v48, %v1530_v32  ;;  %2400 = vmatprep.subr.bf16.mxu1 %v4571_v15 }
 0x386   : > { %v2106_v4 = vmax.f32 %v2104_v36, %v2105_v33  ;;  %v1415_v33 = vrot.slane %v1414_v22, 1 }
 0x387   : > { %v1393_v42 = vrot.slane %v1392_v37, 4  ;;  %v1829_v31 = vpop.permute.xlu1 %1828  ;;  %v1407_v47 = vmax.f32 %v1405_v21, %v1406_v51 }
 0x388   : > { %v4100_v29 = vpop.permute.xlu0 %527  ;;  %v2107_v35 = vrot.slane %v2106_v4, 1  ;;  %v1867_v36 = vadd.f32 %v1829_v31, %v1707_v18  ;;  %v1416_v48 = vmax.f32 %v1414_v22, %v1415_v33  ;;  %2401 = vmatpush3.bf16.msra.mxu1 %v2446_v0  ;;  %v4572_v0 = vld [vmem:[#allocation31_spill] sm:$0xff] }
 0x389   : > { %v1394_v3 = vmax.f32 %v1392_v37, %v1393_v42  ;;  %v1424_v37 = vrot.slane %v1423_v45, 1 }
 0x38a   : > { %v2108_v17 = vmax.f32 %v2106_v4, %v2107_v35  ;;  %v2121_v35 = vrot.slane %v3847_v50, 4 }
 0x38b   : > { %v1395_v34 = vrot.slane %v1394_v3, 2  ;;  %v536_v40 = vpop.permute.xlu1 %535  ;;  %v1425_v12 = vmax.f32 %v1423_v45, %v1424_v37 }
 0x38c   : > { %v4107_v43 = vpop.permute.xlu0 %539  ;;  %v579_v63 = vrot.slane %v536_v40, 1  ;;  %v4112_v16 = vsel %vm2157_vm12, %v2108_v17, %v4062_v30  ;;  %v2122_v18 = vmax.f32 %v3847_v50, %v2121_v35 }
 0x38d   : > { %v1396_v39 = vmax.f32 %v1394_v3, %v1395_v34 }
 0x38e   : > { %v603_v52 = vsel %vm591_vm2, %v578_v20, %v579_v63 }
 0x38f   : > { %v1397_v30 = vrot.slane %v1396_v39, 1  ;;  %v4125_v2 = vadd.f32 %v603_v52, %v4555_v49  ;;  %v1990_v61 = vpop.permute.xlu1 %1989  ;;  %v1866_v49 = vadd.f32 %v1827_v41, %v1706_v38 }
 0x390   : > { %v4127_v55 = vpop.permute.xlu0 %543  ;;  %v2028_v56 = vadd.f32 %v1990_v61, %v1867_v36  ;;  %v2131_v36 = vmax.f32 %v3989_v53, %v2130_v54 }
 0x391   : > { %v1398_v46 = vmax.f32 %v1396_v39, %v1397_v30 }
 0x392   : > { %v2047_v4 = vadd.f32 %v4545_v10, %v2028_v56  ;;  %v2123_v56 = vrot.slane %v2122_v18, 2  ;;  %v2132_v53 = vrot.slane %v2131_v36, 2 }
 0x393   : > { %v1988_v42 = vpop.permute.xlu1 %1987  ;;  %v2179_v5 = vsel %vm2159_vm13, %v1398_v46, %v4090_v1  ;;  %v2139_v1 = vrot.slane %v4035_v58, 4  ;;  %v577_v46 = vrot.slane %v4572_v0, 1  ;;  %v4204_v0 = vld [vmem:[%s4374_s2] ss:$0 sm:$0xff] }
 0x394   : > { %v4135_v31 = vpop.permute.xlu0 %628  ;;  %v2027_v3 = vadd.f32 %v1988_v42, %v1866_v49  ;;  %v2180_v17 = vsel %vm2161_vm14, %v1407_v47, %v2179_v5  ;;  %v2065_v41 = vsel %vm2055_vm8, %v2047_v4, -1e+30 }
 0x395   : > { %v2181_v21 = vsel %vm2163_vm15, %v1416_v48, %v2180_v17  ;;  %v2110_v57 = vsel %vm2072_vm9, %v2065_v41, -inf  ;;  %v2140_v30 = vmax.f32 %v4035_v58, %v2139_v1  ;;  %v2124_v48 = vmax.f32 %v2122_v18, %v2123_v56 }
 0x396   : > { %v2046_v22 = vadd.f32 %v4545_v10, %v2027_v3  ;;  %v2182_v34 = vsel %vm2165_vm0, %v1425_v12, %v2181_v21  ;;  %v2133_v3 = vmax.f32 %v2131_v36, %v2132_v53  ;;  %v604_v12 = vsel %vm591_vm2, %v577_v46, %v578_v20 }
 0x397   : > { %v4148_v40 = vpop.permute.xlu1 %537  ;;  %2183 = vrot.lane.b32.xlu0 %v2182_v34, %s2467_s19  ;;  %v2141_v49 = vrot.slane %v2140_v30, 2  ;;  %v674_v41 = vrot.slane %v4135_v31, 2  ;;  %v2125_v34 = vrot.slane %v2124_v48, 1  ;;  %v575_v20 = vrot.slane %v4100_v29, 1 }
 0x398   : > { %v4151_v45 = vpop.permute.xlu0 %632  ;;  %v2109_v39 = vsel %vm2072_vm9, %v2046_v22, -inf  ;;  %v580_v32 = vrot.slane %v4148_v40, 1  ;;  %v2134_v36 = vrot.slane %v2133_v3, 1 }
 0x399   : > { %v2111_v51 = vmax.f32 %v2109_v39, %v2110_v57  ;;  %v2142_v22 = vmax.f32 %v2140_v30, %v2141_v49  ;;  %v676_v1 = vrot.slane %v4151_v45, 2  ;;  %v610_v39 = vadd.f32 %v604_v12, %v4548_v6 }
 0x39a   : > { %v602_v52 = vsel %vm591_vm2, %v579_v63, %v580_v32  ;;  %v4573_v63 = vld [vmem:[#allocation28_spill] sm:$0xff]  ;;  %v2126_v56 = vmax.f32 %v2124_v48, %v2125_v34 }
 0x39b   : > { %v2112_v61 = vrot.slane %v2111_v51, 4  ;;  %v4164_v33 = vadd.f32 %v602_v52, %v4560_v24  ;;  %v4166_v50 = vpop.permute.xlu1 %541  ;;  %v576_v58 = vrot.slane %v4573_v63, 1 }
 0x39c   : > { %v4168_v38 = vpop.permute.xlu0 %547 }
 0x39d   : > { %v2113_v37 = vmax.f32 %v2111_v51, %v2112_v61  ;;  %v605_v35 = vsel %vm591_vm2, %v576_v58, %v577_v46  ;;  %v2143_v61 = vrot.slane %v2142_v22, 1  ;;  %v606_v49 = vsel %vm591_vm2, %v575_v20, %v576_v58 }
 0x39e   : > { %v609_v57 = vadd.f32 %v605_v35, %v4533_v28 }
 0x39f   : > { %v2114_v4 = vrot.slane %v2113_v37, 2  ;;  %v627_v47 = vpop.permute.xlu1 %626  ;;  %v2144_v35 = vmax.f32 %v2142_v22, %v2143_v61 }
 0x3a0   : > { %v4171_v42 = vpop.permute.xlu0 %634  ;;  %v673_v24 = vrot.slane %v627_v47, 2 }
 0x3a1   : > { %v2115_v5 = vmax.f32 %v2113_v37, %v2114_v4  ;;  %v677_v37 = vrot.slane %v4171_v42, 2  ;;  %v2135_v4 = vmax.f32 %v2133_v3, %v2134_v36  ;;  %v581_v42 = vrot.slane %v4107_v43, 1 }
 0x3a2   : > { %v702_v59 = vsel %vm688_vm3, %v673_v24, %v674_v41  ;;  %v608_v43 = vadd.f32 %v606_v49, %v4531_v25 }
 0x3a3   : > { %v2116_v17 = vrot.slane %v2115_v5, 1  ;;  %v631_v21 = vpop.permute.xlu1 %630  ;;  %v706_v15 = vadd.f32 %v702_v59, %v609_v57  ;;  %v601_v22 = vsel %vm591_vm2, %v580_v32, %v581_v42 }
 0x3a4   : > { %v4181_v54 = vpop.permute.xlu0 %549  ;;  %v675_v18 = vrot.slane %v631_v21, 2  ;;  %v613_v32 = vadd.f32 %v601_v22, %v4566_v23 }
 0x3a5   : > { %v2117_v51 = vmax.f32 %v2115_v5, %v2116_v17  ;;  %v729_v12 = vadd.f32 %v4204_v0, %v706_v15  ;;  %v586_v49 = vrot.slane %v4181_v54, 1 }
 0x3a6   : > { %v700_v31 = vsel %vm688_vm3, %v675_v18, %v676_v1  ;;  %v701_v45 = vsel %vm688_vm3, %v674_v41, %v675_v18  ;;  %v699_v41 = vsel %vm688_vm3, %v676_v1, %v677_v37  ;;  %v582_v18 = vrot.slane %v4166_v50, 1 }
 0x3a7   : > { %v707_v52 = vadd.f32 %v701_v45, %v610_v39  ;;  %v708_v28 = vadd.f32 %v700_v31, %v4125_v2  ;;  %v4195_v6 = vpop.permute.xlu1 %545  ;;  %v2197_v53 = vsel %vm2159_vm13, %v2117_v51, %v4112_v16  ;;  %v747_v51 = vsel %vm745_vm4, %v729_v12, -1e+30 }
 0x3a8   : > { %v4197_v30 = vpop.permute.xlu0 %638  ;;  %v2198_v47 = vsel %vm2161_vm14, %v2126_v56, %v2197_v53  ;;  %v709_v40 = vadd.f32 %v699_v41, %v4164_v33  ;;  %v764_v33 = vsel %vm762_vm5, %v747_v51, -inf }
 0x3a9   : > { %v730_v46 = vadd.f32 %v4204_v0, %v707_v52  ;;  %v731_v2 = vadd.f32 %v4204_v0, %v708_v28  ;;  %v2199_v17 = vsel %vm2163_vm15, %v2135_v4, %v2198_v47  ;;  %v679_v36 = vrot.slane %v4197_v30, 2 }
 0x3aa   : > { %v2200_v34 = vsel %vm2165_vm0, %v2144_v35, %v2199_v17  ;;  %v583_v28 = vrot.slane %v4127_v55, 1  ;;  %v732_v23 = vadd.f32 %v4204_v0, %v709_v40  ;;  %v584_v4 = vrot.slane %v4195_v6, 1 }
 0x3ab   : > { %v749_v63 = vsel %vm745_vm4, %v731_v2, -1e+30  ;;  %v772_v48 = vsel %vm762_vm5, %v730_v46, -inf  ;;  %v4219_v5 = vpop.permute.xlu1 %624  ;;  %2201 = vrot.lane.b32.xlu1 %v2200_v34, %s2465_s17 }
 0x3ac   : > { %v4221_v16 = vpop.permute.xlu0 %553  ;;  %v773_v58 = vsel %vm762_vm5, %v749_v63, -inf  ;;  %v672_v3 = vrot.slane %v4219_v5, 2  ;;  %v599_v55 = vsel %vm591_vm2, %v582_v18, %v583_v28  ;;  %v585_v63 = vrot.slane %v4168_v38, 1 }
 0x3ad   : > { %v774_v21 = vmax.f32 %v772_v48, %v773_v58  ;;  %v598_v34 = vsel %vm591_vm2, %v583_v28, %v584_v4 }
 0x3ae   : > { %v703_v57 = vsel %vm688_vm3, %v672_v3, %v673_v24  ;;  %v600_v24 = vsel %vm591_vm2, %v581_v42, %v582_v18  ;;  %v596_v6 = vsel %vm591_vm2, %v585_v63, %v586_v49  ;;  %v597_v38 = vsel %vm591_vm2, %v584_v4, %v585_v63 }
 0x3af   : > { %v775_v25 = vrot.slane %v774_v21, 4  ;;  %v705_v39 = vadd.f32 %v703_v57, %v608_v43  ;;  %v637_v1 = vpop.permute.xlu1 %636  ;;  %v614_v30 = vadd.f32 %v600_v24, %v4561_v9  ;;  %v781_v9 = vsel %vm762_vm5, %v732_v23, -inf }
 0x3b0   : > { %v678_v59 = vrot.slane %v637_v1, 2  ;;  %v4244_v31 = vpop.permute.xlu0 %642  ;;  %v615_v43 = vadd.f32 %v599_v55, %v4567_v26  ;;  %v618_v40 = vadd.f32 %v596_v6, %v4532_v60  ;;  %v588_v24 = vrot.slane %v4221_v16, 1 }
 0x3b1   : > { %v776_v50 = vmax.f32 %v774_v21, %v775_v25  ;;  %v728_v45 = vadd.f32 %v4204_v0, %v705_v39  ;;  %v681_v18 = vrot.slane %v4244_v31, 2  ;;  %v617_v28 = vadd.f32 %v597_v38, %v4568_v27 }
 0x3b2   : > { %v698_v52 = vsel %vm688_vm3, %v677_v37, %v678_v59  ;;  %v697_v53 = vsel %vm688_vm3, %v678_v59, %v679_v36 }
 0x3b3   : > { %v763_v61 = vsel %vm762_vm5, %v728_v45, -inf  ;;  %v710_v15 = vadd.f32 %v698_v52, %v613_v32  ;;  %v552_v56 = vpop.permute.xlu1 %551  ;;  %v777_v46 = vrot.slane %v776_v50, 2  ;;  %v711_v48 = vadd.f32 %v697_v53, %v614_v30 }
 0x3b4   : > { %v765_v2 = vmax.f32 %v763_v61, %v764_v33  ;;  %v4265_v42 = vpop.permute.xlu0 %557  ;;  %v587_v39 = vrot.slane %v552_v56, 1  ;;  %v616_v45 = vadd.f32 %v598_v34, %v4564_v44 }
 0x3b5   : > { %v733_v37 = vadd.f32 %v4204_v0, %v710_v15  ;;  %v778_v54 = vmax.f32 %v776_v50, %v777_v46  ;;  %v734_v57 = vadd.f32 %v4204_v0, %v711_v48 }
 0x3b6   : > { %v766_v47 = vrot.slane %v765_v2, 4  ;;  %v594_v56 = vsel %vm591_vm2, %v587_v39, %v588_v24  ;;  %v595_v44 = vsel %vm591_vm2, %v586_v49, %v587_v39 }
 0x3b7   : > { %v751_v35 = vsel %vm745_vm4, %v733_v37, -1e+30  ;;  %v641_v12 = vpop.permute.xlu1 %640  ;;  %v779_v51 = vrot.slane %v778_v54, 1  ;;  %v790_v60 = vsel %vm762_vm5, %v734_v57, -inf  ;;  %v619_v4 = vadd.f32 %v595_v44, %v4535_v7 }
 0x3b8   : > { %v767_v58 = vmax.f32 %v765_v2, %v766_v47  ;;  %v782_v17 = vsel %vm762_vm5, %v751_v35, -inf  ;;  %v680_v21 = vrot.slane %v641_v12, 2  ;;  %v649_v50 = vpop.permute.xlu0 %648  ;;  %v620_v35 = vadd.f32 %v594_v56, %v4552_v14 }
 0x3b9   : > { %v783_v41 = vmax.f32 %v781_v9, %v782_v17  ;;  %v780_v23 = vmax.f32 %v778_v54, %v779_v51  ;;  %v684_v12 = vrot.slane %v649_v50, 2 }
 0x3ba   : > { %v768_v22 = vrot.slane %v767_v58, 2  ;;  %v696_v26 = vsel %vm688_vm3, %v679_v36, %v680_v21  ;;  %v695_v31 = vsel %vm688_vm3, %v680_v21, %v681_v18  ;;  %v590_v36 = vrot.slane %v4265_v42, 1 }
 0x3bb   : > { %v784_v25 = vrot.slane %v783_v41, 4  ;;  %v556_v1 = vpop.permute.xlu1 %555  ;;  %v712_v32 = vadd.f32 %v696_v26, %v615_v43  ;;  %v713_v2 = vadd.f32 %v695_v31, %v616_v45 }
 0x3bc   : > { %v769_v59 = vmax.f32 %v767_v58, %v768_v22  ;;  %v589_v37 = vrot.slane %v556_v1, 1  ;;  %v607_v47 = vsel %vm591_vm2, %v590_v36, %v575_v20  ;;  %v653_v42 = vpop.permute.xlu0 %652 }
 0x3bd   : > { %v785_v52 = vmax.f32 %v783_v41, %v784_v25  ;;  %v735_v61 = vadd.f32 %v4204_v0, %v712_v32  ;;  %v736_v58 = vadd.f32 %v4204_v0, %v713_v2  ;;  %v623_v20 = vadd.f32 %v607_v47, %v4569_v13 }
 0x3be   : > { %v770_v33 = vrot.slane %v769_v59, 1  ;;  %v593_v6 = vsel %vm591_vm2, %v588_v24, %v589_v37  ;;  %v686_v41 = vrot.slane %v653_v42, 2  ;;  %v592_v22 = vsel %vm591_vm2, %v589_v37, %v590_v36 }
 0x3bf   : > { %v786_v15 = vrot.slane %v785_v52, 2  ;;  %v645_v16 = vpop.permute.xlu1 %644  ;;  %v753_v27 = vsel %vm745_vm4, %v735_v61, -1e+30  ;;  %v799_v26 = vsel %vm762_vm5, %v736_v58, -inf  ;;  %vm2205_vm2 = vcmask 261120  }
 0x3c0   : > { %v771_v46 = vmax.f32 %v769_v59, %v770_v33  ;;  %v791_v30 = vsel %vm762_vm5, %v753_v27, -inf  ;;  %v682_v55 = vrot.slane %v645_v16, 2  ;;  %v621_v59 = vadd.f32 %v593_v6, %v4559_v19 }
 0x3c1   : > { %v787_v53 = vmax.f32 %v785_v52, %v786_v15  ;;  %v792_v49 = vmax.f32 %v790_v60, %v791_v30  ;;  %v622_v16 = vadd.f32 %v592_v22, %v4570_v11 }
 0x3c2   : > { %v2154_v63 = vsel %vm2153_vm10, %v780_v23, %v771_v46  ;;  %v694_v9 = vsel %vm688_vm3, %v681_v18, %v682_v55 }
 0x3c3   : > { %v788_v48 = vrot.slane %v787_v53, 1  ;;  %v647_v54 = vpop.permute.xlu1 %646  ;;  %v793_v7 = vrot.slane %v792_v49, 4  ;;  %v714_v17 = vadd.f32 %v694_v9, %v617_v28 }
 0x3c4   : > { %v683_v29 = vrot.slane %v647_v54, 2 }
 0x3c5   : > { %v789_v43 = vmax.f32 %v787_v53, %v788_v48  ;;  %v794_v21 = vmax.f32 %v792_v49, %v793_v7  ;;  %v737_v14 = vadd.f32 %v4204_v0, %v714_v17 }
 0x3c6   : > { %v692_v38 = vsel %vm688_vm3, %v683_v29, %v684_v12  ;;  %v693_v34 = vsel %vm688_vm3, %v682_v55, %v683_v29 }
 0x3c7   : > { %v715_v18 = vadd.f32 %v693_v34, %v618_v40  ;;  %v716_v57 = vadd.f32 %v692_v38, %v619_v4  ;;  %v651_v25 = vpop.permute.xlu1 %650  ;;  %v2156_v13 = vsel %vm2155_vm11, %v789_v43, %v2154_v63  ;;  %v795_v39 = vrot.slane %v794_v21, 2 }
 0x3c8   : > { %v755_v1 = vsel %vm745_vm4, %v737_v14, -1e+30  ;;  %v685_v51 = vrot.slane %v651_v25, 2 }
 0x3c9   : > { %v800_v32 = vsel %vm762_vm5, %v755_v1, -inf  ;;  %v738_v50 = vadd.f32 %v4204_v0, %v715_v18  ;;  %v739_v45 = vadd.f32 %v4204_v0, %v716_v57  ;;  %v796_v40 = vmax.f32 %v794_v21, %v795_v39 }
 0x3ca   : > { %v801_v24 = vmax.f32 %v799_v26, %v800_v32  ;;  %v690_v52 = vsel %vm688_vm3, %v685_v51, %v686_v41  ;;  %v691_v31 = vsel %vm688_vm3, %v684_v12, %v685_v51 }
 0x3cb   : > { %v757_v28 = vsel %vm745_vm4, %v739_v45, -1e+30  ;;  %v808_v33 = vsel %vm762_vm5, %v738_v50, -inf  ;;  %v717_v19 = vadd.f32 %v691_v31, %v620_v35  ;;  %v718_v36 = vadd.f32 %v690_v52, %v621_v59  ;;  %v655_v61 = vpop.permute.xlu1 %654 }
 0x3cc   : > { %v797_v15 = vrot.slane %v796_v40, 1  ;;  %v802_v60 = vrot.slane %v801_v24, 4  ;;  %v809_v56 = vsel %vm762_vm5, %v757_v28, -inf  ;;  %v687_v44 = vrot.slane %v655_v61, 2 }
 0x3cd   : > { %v810_v23 = vmax.f32 %v808_v33, %v809_v56  ;;  %v740_v46 = vadd.f32 %v4204_v0, %v717_v19  ;;  %v741_v2 = vadd.f32 %v4204_v0, %v718_v36 }
 0x3ce   : > { %v803_v27 = vmax.f32 %v801_v24, %v802_v60  ;;  %v689_v53 = vsel %vm688_vm3, %v686_v41, %v687_v44  ;;  %v704_v30 = vsel %vm688_vm3, %v687_v44, %v672_v3  ;;  %v798_v37 = vmax.f32 %v796_v40, %v797_v15 }
 0x3cf   : > { %v811_v55 = vrot.slane %v810_v23, 4  ;;  %v759_v4 = vsel %vm745_vm4, %v741_v2, -1e+30  ;;  %v817_v11 = vsel %vm762_vm5, %v740_v46, -inf  ;;  %v719_v47 = vadd.f32 %v689_v53, %v622_v16 }
 0x3d0   : > { %v804_v49 = vrot.slane %v803_v27, 2  ;;  %v818_v42 = vsel %vm762_vm5, %v759_v4, -inf  ;;  %v720_v63 = vadd.f32 %v704_v30, %v623_v20  ;;  %v2158_v48 = vsel %vm2157_vm12, %v798_v37, %v2156_v13 }
 0x3d1   : > { %v812_v35 = vmax.f32 %v810_v23, %v811_v55  ;;  %v819_v12 = vmax.f32 %v817_v11, %v818_v42  ;;  %v742_v5 = vadd.f32 %v4204_v0, %v719_v47  ;;  %vm2233_vm3 = vcmask 392192  }
 0x3d2   : > { %v805_v8 = vmax.f32 %v803_v27, %v804_v49  ;;  %v743_v3 = vadd.f32 %v4204_v0, %v720_v63 }
 0x3d3   : > { %v813_v9 = vrot.slane %v812_v35, 2  ;;  %v820_v54 = vrot.slane %v819_v12, 4  ;;  %v826_v58 = vsel %vm762_vm5, %v742_v5, -inf }
 0x3d4   : > { %v761_v7 = vsel %vm745_vm4, %v743_v3, -1e+30  ;;  %v806_v17 = vrot.slane %v805_v8, 1 }
 0x3d5   : > { %v821_v29 = vmax.f32 %v819_v12, %v820_v54  ;;  %v827_v43 = vsel %vm762_vm5, %v761_v7, -inf  ;;  %v814_v20 = vmax.f32 %v812_v35, %v813_v9 }
 0x3d6   : > { %v828_v6 = vmax.f32 %v826_v58, %v827_v43  ;;  %v807_v41 = vmax.f32 %v805_v8, %v806_v17 }
 0x3d7   : > { %v815_v21 = vrot.slane %v814_v20, 1  ;;  %v822_v14 = vrot.slane %v821_v29, 2 }
 0x3d8   : > { %v829_v38 = vrot.slane %v828_v6, 4  ;;  %v2160_v34 = vsel %vm2159_vm13, %v807_v41, %v2158_v48 }
 0x3d9   : > { %v816_v0 = vmax.f32 %v814_v20, %v815_v21  ;;  %v823_v22 = vmax.f32 %v821_v29, %v822_v14 }
 0x3da   : > { %v830_v18 = vmax.f32 %v828_v6, %v829_v38 }
 0x3db   : > { %v824_v57 = vrot.slane %v823_v22, 1  ;;  %v2162_v25 = vsel %vm2161_vm14, %v816_v0, %v2160_v34 }
 0x3dc   : > { %v831_v62 = vrot.slane %v830_v18, 2 }
 0x3dd   : > { %v825_v13 = vmax.f32 %v823_v22, %v824_v57 }
 0x3de   : > { %v832_v39 = vmax.f32 %v830_v18, %v831_v62 }
 0x3df   : > { %v2164_v26 = vsel %vm2163_vm15, %v825_v13, %v2162_v25 }
 0x3e0   : > { %v833_v1 = vrot.slane %v832_v39, 1 }
 0x3e2   : > { %v834_v51 = vmax.f32 %v832_v39, %v833_v1 }
 0x3e4   : > { %v2166_v59 = vsel %vm2165_vm0, %v834_v51, %v2164_v26 }
 0x409   : > { %v2184_v32 = vpop.permute.xlu0 %2183 }
 0x40a   : > { %v2204_v50 = vsel %vm762_vm5, %v2166_v59, %v2184_v32 }
 0x41d   : > { %v2202_v45 = vpop.permute.xlu1 %2201 }
 0x41e   : > { %v2206_v40 = vsel %vm2205_vm2, %v2204_v50, %v2202_v45 }
 0x41f   : > { %v2207_v24 = vmax.f32 %v2206_v40, 0.0 }
 0x421   : > { %v2208_v52 = vpack.c.bf16 %v2207_v24, %v2207_v24 }
 0x423   : > { %2403 = vmatmul.mubr.msk.bf16.vlgmr.msra.gmra.mrb[12].mxu1 %vm2233_vm3, %v2208_v52 }
 0x4f6   : > { %v2271_v31 = vpop.f32.mrb[12].mxu1 }
 0x4f7   : > { %v2272_v28 = vadd.f32 %v2271_v31, %v4545_v10  ;;  %v2404_v33 = vpop.f32.mrb[13].mxu1 }
 0x4f8   : > { %v2274_v19 = vpop.f32.mrb[14].mxu1 }
 0x4f9   : > { %v2405_v36 = vpop.f32.mrb[15].mxu1  ;;  %v2278_v61 = vsel %vm2277_vm6, %v2272_v28, -inf }
 0x4fa   : > { %2279 = vmax.xlane.f32.xlu0 %v2278_v61 }
 0x587   : > { %v2280_v15 = vpop.xlane.xlu0 %2279 }
 0x588   : > { %v2281_v60 = vsub.f32 %v2272_v28, %v2280_v15 }
 0x58a   : > { %v2282_v56 = vmul.f32 1.442695, %v2281_v60 }
 0x58c   : > { %2447 = vpow2.f32 %v2282_v56 }
 0x596   : > { %v2448_v44 = vpop.eup %2447 }
 0x597   : > { %v2284_v16 = vsel %vm2277_vm6, %v2448_v44, 0.0 }
 0x598   : > { %2285 = vadd.xlane.f32.xlu1 %v2284_v16 }
 0x625   : > { %v2286_v23 = vpop.xlane.xlu1 %2285 }
 0x626   : > { %2449 = vlog2.f32 %v2286_v23 }
 0x630   : > { %v2450_v10 = vpop.eup %2449 }
 0x631   : > { %v2288_v46 = vmul.f32 0.6931472, %v2450_v10 }
 0x633   : > { %v2289_v2 = vsub.f32 %v2281_v60, %v2288_v46 }
 0x635   : > { %2290 = vst.msk [vmem:[%s197_s5] sm:$0xff] %vm2277_vm6, %v2289_v2 }
 0x636 PF: > { %s14_s15 = sadd.s32 1, %s2458_s15  }
 0x637   : > { %p11_p5 = scmp.ge.s32.totalorder %s14_s15, 4  }
 0x639   :  { %13 = sbr.rel (!%p11_p5) target bundleno = 1 (0x1), region = 66 }

</bundles_post_ra>
